<compile_context>
chip_gen: v6e
topology: v6e:2x2x1
jax: 0.10.0
libtpu: 0.0.40
codegen_flags: <defaults>
</compile_context>

<pallas_src>
import math
import functools

import jax
import jax.numpy as jnp
from jax import lax
from jax.experimental import pallas as pl
from jax.experimental.pallas import tpu as pltpu


# ----------------------------------------------------------------------------
# Tiling helpers
# ----------------------------------------------------------------------------
def _pick_tile(dim: int, target: int, align: int) -> int:
    """Largest tile <= target that divides `dim` and is a multiple of `align`.
    Falls back to the full dim (block == full array dim is always legal)."""
    t = min(target, dim)
    t -= t % align
    while t >= align:
        if dim % t == 0:
            return t
        t -= align
    return dim


_VMEM_LIMIT = 32 * 1024 * 1024  # safe on v5e/v6e/v7x; raises v5e's 16 MiB default


# ----------------------------------------------------------------------------
# Tiled linear:  y = x @ w + b   (K-reduction accumulator in VMEM)
# ----------------------------------------------------------------------------
def _linear_kernel(x_ref, w_ref, b_ref, o_ref, acc_ref, *, compute_dtype):
    k = pl.program_id(2)

    @pl.when(k == 0)
    def _():
        acc_ref[...] = jnp.zeros(acc_ref.shape, acc_ref.dtype)

    acc_ref[...] += jnp.dot(
        x_ref[...].astype(compute_dtype),
        w_ref[...].astype(compute_dtype),
        preferred_element_type=jnp.float32,
    )

    @pl.when(k == pl.num_programs(2) - 1)
    def _():
        o_ref[...] = (acc_ref[...] + b_ref[...].astype(jnp.float32)).astype(o_ref.dtype)


def linear(x2d, w, b, *, compute_dtype, tm=256, tn=256, tk=512):
    M, K = x2d.shape
    _, N = w.shape
    tm = _pick_tile(M, tm, 8)
    tn = _pick_tile(N, tn, 128)
    tk = _pick_tile(K, tk, 128)
    grid = (M // tm, N // tn, K // tk)

    isz = x2d.dtype.itemsize
    cost = pl.CostEstimate(
        flops=int(2 * M * N * K),
        transcendentals=0,
        bytes_accessed=int(M * K * isz + K * N * w.dtype.itemsize + M * N * isz),
    )
    kernel = functools.partial(_linear_kernel, compute_dtype=compute_dtype)
    return pl.pallas_call(
        kernel,
        out_shape=jax.ShapeDtypeStruct((M, N), x2d.dtype),
        grid_spec=pltpu.PrefetchScalarGridSpec(
            num_scalar_prefetch=0,
            grid=grid,
            in_specs=[
                pl.BlockSpec((tm, tk), lambda i, j, kk: (i, kk)),
                pl.BlockSpec((tk, tn), lambda i, j, kk: (kk, j)),
                pl.BlockSpec((1, tn), lambda i, j, kk: (0, j)),
            ],
            out_specs=pl.BlockSpec((tm, tn), lambda i, j, kk: (i, j)),
            scratch_shapes=[pltpu.VMEM((tm, tn), jnp.float32)],
        ),
        compiler_params=pltpu.CompilerParams(
            dimension_semantics=("parallel", "parallel", "arbitrary"),
            vmem_limit_bytes=_VMEM_LIMIT,
        ),
        cost_estimate=cost,
    )(x2d, w, b.reshape(1, N))


# ----------------------------------------------------------------------------
# Fused q/k/v up-projection: reads each h tile once, emits q, k, v in [B, S, H]
# ----------------------------------------------------------------------------
def _qkv_up_kernel(h_ref, wq_ref, wk_ref, wv_ref, bq_ref, bk_ref, bv_ref,
                   q_ref, k_ref, v_ref, *, qcs, kvcs, compute_dtype):
    h = h_ref[0]                                   # (tm, qcs + 2*kvcs) read once
    hq = h[:, :qcs].astype(compute_dtype)
    hk = h[:, qcs:qcs + kvcs].astype(compute_dtype)
    hv = h[:, qcs + kvcs:].astype(compute_dtype)

    q = jnp.dot(hq, wq_ref[...].astype(compute_dtype), preferred_element_type=jnp.float32)
    k = jnp.dot(hk, wk_ref[...].astype(compute_dtype), preferred_element_type=jnp.float32)
    v = jnp.dot(hv, wv_ref[...].astype(compute_dtype), preferred_element_type=jnp.float32)

    q_ref[0] = (q + bq_ref[...].astype(jnp.float32)).astype(q_ref.dtype)
    k_ref[0] = (k + bk_ref[...].astype(jnp.float32)).astype(k_ref.dtype)
    v_ref[0] = (v + bv_ref[...].astype(jnp.float32)).astype(v_ref.dtype)


def qkv_up_projection(h3, w_q, b_q, w_k, b_k, w_v, b_v, *, hidden_size, qcs, kvcs,
                      compute_dtype, tm=256, tn=256):
    B, S, C = h3.shape
    H = hidden_size
    tm = _pick_tile(S, tm, 8)
    tn = _pick_tile(H, tn, 128)
    grid = (B, S // tm, H // tn)

    isz = h3.dtype.itemsize
    cost = pl.CostEstimate(
        flops=int(2 * B * S * (qcs + 2 * kvcs) * H),
        transcendentals=0,
        bytes_accessed=int(B * S * C * isz + (qcs + 2 * kvcs) * H * isz + 3 * B * S * H * isz),
    )
    kernel = functools.partial(_qkv_up_kernel, qcs=qcs, kvcs=kvcs, compute_dtype=compute_dtype)

    h_spec = pl.BlockSpec((1, tm, C), lambda b, s, n: (b, s, 0))
    wq_spec = pl.BlockSpec((qcs, tn), lambda b, s, n: (0, n))
    wkv_spec = pl.BlockSpec((kvcs, tn), lambda b, s, n: (0, n))
    bias_spec = pl.BlockSpec((1, tn), lambda b, s, n: (0, n))
    out_spec = pl.BlockSpec((1, tm, tn), lambda b, s, n: (b, s, n))
    out_sds = jax.ShapeDtypeStruct((B, S, H), h3.dtype)

    return pl.pallas_call(
        kernel,
        out_shape=(out_sds, out_sds, out_sds),
        grid_spec=pltpu.PrefetchScalarGridSpec(
            num_scalar_prefetch=0,
            grid=grid,
            in_specs=[h_spec, wq_spec, wkv_spec, wkv_spec, bias_spec, bias_spec, bias_spec],
            out_specs=[out_spec, out_spec, out_spec],
        ),
        compiler_params=pltpu.CompilerParams(
            dimension_semantics=("parallel", "parallel", "parallel"),
            vmem_limit_bytes=_VMEM_LIMIT,
        ),
        cost_estimate=cost,
    )(h3, w_q, w_k, w_v, b_q.reshape(1, H), b_k.reshape(1, H), b_v.reshape(1, H))


# ----------------------------------------------------------------------------
# Flash-style attention over [B, S, H] arrays (heads sliced via BlockSpec)
# ----------------------------------------------------------------------------
def _flash_attn_kernel(q_ref, k_ref, v_ref, o_ref, m_sc, l_sc, acc_sc, *,
                       scale, causal, block_q, block_kv, compute_dtype):
    qi = pl.program_id(2)
    ki = pl.program_id(3)
    nkv = pl.num_programs(3)

    @pl.when(ki == 0)
    def _():
        m_sc[...] = jnp.full(m_sc.shape, -jnp.inf, dtype=m_sc.dtype)
        l_sc[...] = jnp.zeros(l_sc.shape, l_sc.dtype)
        acc_sc[...] = jnp.zeros(acc_sc.shape, acc_sc.dtype)

    q_start = qi * block_q
    kv_start = ki * block_kv

    def compute():
        q = q_ref[0].astype(compute_dtype)        # (block_q, hd)
        k = k_ref[0].astype(compute_dtype)        # (block_kv, hd)
        v = v_ref[0].astype(compute_dtype)        # (block_kv, hd)

        # s = q @ k^T, contracted on hd (no in-kernel transpose materialization)
        s = lax.dot_general(q, k, (((1,), (1,)), ((), ())),
                            preferred_element_type=jnp.float32) * scale

        if causal:
            row = q_start + lax.broadcasted_iota(jnp.int32, s.shape, 0)
            col = kv_start + lax.broadcasted_iota(jnp.int32, s.shape, 1)
            s = jnp.where(col <= row, s, -jnp.inf)

        m_prev = m_sc[...]
        m_new = jnp.maximum(m_prev, jnp.max(s, axis=-1, keepdims=True))
        alpha = jnp.exp(m_prev - m_new)
        p = jnp.exp(s - m_new)
        l_sc[...] = alpha * l_sc[...] + jnp.sum(p, axis=-1, keepdims=True)
        acc_sc[...] = alpha * acc_sc[...] + jnp.dot(
            p.astype(compute_dtype), v, preferred_element_type=jnp.float32)
        m_sc[...] = m_new

    if causal:
        # Skip KV blocks that are entirely above the causal diagonal.
        # TODO(synk): trim the kv grid itself via scalar-prefetch index_map to also
        # skip the (wasted) K/V DMAs, not just the MXU work.
        pl.when(kv_start <= q_start + block_q - 1)(compute)
    else:
        compute()

    @pl.when(ki == nkv - 1)
    def _():
        # Single division per output element, outside the hot loop (exact to keep
        # tight numerics; it is not on the critical KV loop).
        o_ref[0] = (acc_sc[...] * pl.reciprocal(l_sc[...], approx=False)).astype(o_ref.dtype)


def flash_attention(q, k, v, *, num_heads, head_dim, scale, causal,
                    compute_dtype, block_q=128, block_kv=128):
    """q, k, v, out: [B, S, H] with heads laid out along the last axis.

    The per-head hd columns are selected purely via BlockSpec index_maps, so no
    [B,S,H] <-> [B,nH,S,hd] transposes ever touch HBM.
    NOTE: head_dim should be a multiple of 128 for lane-dense DMA/stores.
    TODO(synk): pack several heads per block when head_dim < 128.
    """
    B, S, H = q.shape
    bq = _pick_tile(S, block_q, 8)
    bk = _pick_tile(S, block_kv, 8)
    grid = (B, num_heads, S // bq, S // bk)

    kernel = functools.partial(
        _flash_attn_kernel, scale=scale, causal=causal,
        block_q=bq, block_kv=bk, compute_dtype=compute_dtype)

    q_spec = pl.BlockSpec((1, bq, head_dim), lambda b, h, qi, ki: (b, qi, h))
    kv_spec = pl.BlockSpec((1, bk, head_dim), lambda b, h, qi, ki: (b, ki, h))
    o_spec = pl.BlockSpec((1, bq, head_dim), lambda b, h, qi, ki: (b, qi, h))

    isz = q.dtype.itemsize
    cost = pl.CostEstimate(
        flops=int(4 * B * num_heads * S * S * head_dim),
        transcendentals=int(B * num_heads * S * S),
        bytes_accessed=int(4 * B * S * H * isz),
    )
    return pl.pallas_call(
        kernel,
        out_shape=jax.ShapeDtypeStruct((B, S, H), q.dtype),
        grid_spec=pltpu.PrefetchScalarGridSpec(
            num_scalar_prefetch=0,
            grid=grid,
            in_specs=[q_spec, kv_spec, kv_spec],
            out_specs=o_spec,
            scratch_shapes=[
                pltpu.VMEM((bq, 1), jnp.float32),        # running max
                pltpu.VMEM((bq, 1), jnp.float32),        # running sum
                pltpu.VMEM((bq, head_dim), jnp.float32),  # output accumulator
            ],
        ),
        compiler_params=pltpu.CompilerParams(
            dimension_semantics=("parallel", "parallel", "parallel", "arbitrary"),
            vmem_limit_bytes=_VMEM_LIMIT,
        ),
        cost_estimate=cost,
    )(q, k, v)


# ----------------------------------------------------------------------------
# Module (parameters + forward glue)
# ----------------------------------------------------------------------------
class MultiHeadLatentAttentionPallas:
    def __init__(
        self,
        hidden_size: int,
        query_compression_size: int,
        key_value_compression_size: int,
        num_attention_heads: int,
        attention_multiplier: float,
        position_embedding_type: str,
        add_bias: bool,
        softmax_dropout: float,
        dropout: float,
        init_method: str,
        initializer_range: float,
        m_width: float,
        num_layers: int,
        causal: bool,
        layer_idx: int,
        use_padding_free_transformer: bool,
        key: jax.Array,
        matmul_dtype=jnp.bfloat16,   # MXU-input dtype (fp32 accumulation always)
    ):
        assert position_embedding_type != "rope"  # NotImplementedError in reference
        assert hidden_size % num_attention_heads == 0
        self.hidden_size = hidden_size
        self.num_heads = num_attention_heads
        self.head_dim = hidden_size // num_attention_heads
        self.qcs = query_compression_size
        self.kvcs = key_value_compression_size
        self.causal = causal
        self.attention_multiplier = attention_multiplier
        self.add_bias = add_bias
        self.matmul_dtype = matmul_dtype
        # softmax_dropout / dropout are identities in eval / p=0 mode.

        std = initializer_range
        if init_method == "mup":
            std /= math.sqrt(m_width)
        std_proj = initializer_range / math.sqrt(2 * num_layers)
        if init_method == "mup":
            std_proj /= math.sqrt(m_width)

        ks = jax.random.split(key, 5)
        H, Q, KV = hidden_size, self.qcs, self.kvcs
        dt = jnp.float32

        def init_w(k, shape, s):
            return (jax.random.normal(k, shape, dtype=dt) * s).astype(dt)

        def init_b(n):
            return jnp.zeros((n,), dtype=dt)

        # weights stored [in, out]
        self.w_down = init_w(ks[0], (H, Q + 2 * KV), std)
        self.b_down = init_b(Q + 2 * KV)
        self.w_qup = init_w(ks[1], (Q, H), std)
        self.b_qup = init_b(H)
        self.w_kup = init_w(ks[2], (KV, H), std)
        self.b_kup = init_b(H)
        self.w_vup = init_w(ks[3], (KV, H), std)
        self.b_vup = init_b(H)
        self.w_proj = init_w(ks[4], (H, H), std_proj)
        self.b_proj = init_b(H)
        # zero biases already act as "no bias" when add_bias is False

    def _softmax_scale(self):
        if self.attention_multiplier is None:
            return 1.0 / math.sqrt(self.head_dim)
        return float(self.attention_multiplier)

    def __call__(self, hidden_states):
        B, S, H = hidden_states.shape
        cdt = self.matmul_dtype
        x2d = hidden_states.reshape(B * S, H)

        # down projection (tiled matmul with K-reduction accumulator)
        h = linear(x2d, self.w_down, self.b_down, compute_dtype=cdt)
        h3 = h.reshape(B, S, self.qcs + 2 * self.kvcs)          # free reshape

        # fused q/k/v up-projections: each h tile read from HBM once,
        # outputs already in [B, S, H] attention layout (no transposes).
        q, k, v = qkv_up_projection(
            h3, self.w_qup, self.b_qup, self.w_kup, self.b_kup,
            self.w_vup, self.b_vup,
            hidden_size=H, qcs=self.qcs, kvcs=self.kvcs, compute_dtype=cdt)

        # flash attention; output is lane-dense [B, S, H] (merge-heads is free)
        attn = flash_attention(
            q, k, v, num_heads=self.num_heads, head_dim=self.head_dim,
            scale=self._softmax_scale(), causal=self.causal, compute_dtype=cdt)

        # output projection
        # TODO(synk): fuse c_proj into the attention finalize to save one more
        #             full [B*S, H] HBM round trip on bandwidth-limited chips.
        out = linear(attn.reshape(B * S, H), self.w_proj, self.b_proj, compute_dtype=cdt)
        return out.reshape(B, S, H)


# ----------------------------------------------------------------------------
# Pure-JAX reference (for correctness check)
# ----------------------------------------------------------------------------
def reference_forward(mod: MultiHeadLatentAttentionPallas, x):
    B, S, H = x.shape
    h = x @ mod.w_down + mod.b_down
    q_c = h[..., : mod.qcs]
    k_c = h[..., mod.qcs: mod.qcs + mod.kvcs]
    v_c = h[..., mod.qcs + mod.kvcs:]
    q = q_c @ mod.w_qup + mod.b_qup
    k = k_c @ mod.w_kup + mod.b_kup
    v = v_c @ mod.w_vup + mod.b_vup
    nH, hd = mod.num_heads, mod.head_dim
    q = q.reshape(B, S, nH, hd).transpose(0, 2, 1, 3)
    k = k.reshape(B, S, nH, hd).transpose(0, 2, 1, 3)
    v = v.reshape(B, S, nH, hd).transpose(0, 2, 1, 3)
    scale = mod._softmax_scale()
    s = jnp.einsum("bhqd,bhkd->bhqk", q, k) * scale
    if mod.causal:
        mask = jnp.tril(jnp.ones((S, S), dtype=bool))
        s = jnp.where(mask, s, -jnp.inf)
    p = jax.nn.softmax(s, axis=-1)
    o = jnp.einsum("bhqk,bhkd->bhqd", p, v)
    o = o.transpose(0, 2, 1, 3).reshape(B, S, nH * hd)
    return o @ mod.w_proj + mod.b_proj


# ----------------------------------------------------------------------------
if __name__ == "__main__":
    key = jax.random.PRNGKey(0)
    k_param, k_input = jax.random.split(key)

    # Small but TPU-shaped config: head_dim = 128 (lane-dense), S = 256 so the
    # flash kernel runs 2x2 q/kv tiles and exercises accumulation + causal skip.
    batch, seq, hidden = 2, 256, 512
    num_heads = 4                 # head_dim = 128
    qcs, kvcs = 128, 128

    module = MultiHeadLatentAttentionPallas(
        hidden_size=hidden,
        query_compression_size=qcs,
        key_value_compression_size=kvcs,
        num_attention_heads=num_heads,
        attention_multiplier=0.125,
        position_embedding_type="learned_absolute",
        add_bias=True,
        softmax_dropout=0.0,
        dropout=0.0,
        init_method="normal",
        initializer_range=0.02,
        m_width=1.0,
        num_layers=4,
        causal=True,
        layer_idx=0,
        use_padding_free_transformer=False,
        key=k_param,
        matmul_dtype=jnp.float32,  # fp32 for the tight check; use bf16 in production
    )

    x = jax.random.normal(k_input, (batch, seq, hidden), dtype=jnp.float32)

    out = jax.block_until_ready(module(x))
    ref = jax.block_until_ready(reference_forward(module, x))

    assert out.shape == (batch, seq, hidden)
    max_err = float(jnp.max(jnp.abs(out - ref)))
    assert jnp.allclose(out, ref, atol=2e-4, rtol=2e-4), (
        "mismatch vs reference: max abs err = %g" % max_err
    )

    print("KERNEL_OK")
</pallas_src>

<mosaic_0001>
module attributes {stable_mosaic.version = 11 : i64} {
  func.func @_linear_kernel(%arg0: i32, %arg1: i32, %arg2: i32, %arg3: memref<256x512xf32, #tpu.memory_space<vmem>>, %arg4: memref<512x128xf32, #tpu.memory_space<vmem>>, %arg5: memref<1x128xf32, #tpu.memory_space<vmem>>, %arg6: memref<256x128xf32, #tpu.memory_space<vmem>>, %arg7: memref<256x128xf32, #tpu.memory_space<vmem>>) attributes {dimension_semantics = [#tpu.dimension_semantics<parallel>, #tpu.dimension_semantics<parallel>, #tpu.dimension_semantics<arbitrary>], iteration_bounds = array<i64: 2, 3, 1>, scalar_prefetch = 0 : i64, scratch_operands = 1 : i64, tpu.core_type = #tpu.core_type<tc>, window_params = [{transform_indices = @transform_0, window_bounds = array<i64: 256, 512>}, {transform_indices = @transform_1, window_bounds = array<i64: 512, 128>}, {transform_indices = @transform_2, window_bounds = array<i64: 1, 128>}, {transform_indices = @transform_3, window_bounds = array<i64: 256, 128>}]} {
    %c0_i32 = arith.constant 0 : i32
    %0 = arith.cmpi eq, %arg2, %c0_i32 : i32
    %1 = arith.extui %0 : i1 to i32
    %c0_i32_0 = arith.constant 0 : i32
    %2 = arith.cmpi ne, %1, %c0_i32_0 : i32
    scf.if %2 {
      %cst_10 = arith.constant 0.000000e+00 : f32
      %12 = vector.broadcast %cst_10 : f32 to vector<256x128xf32>
      %c0_11 = arith.constant 0 : index
      %c0_12 = arith.constant 0 : index
      %13 = vector.load %arg7[%c0_11, %c0_12] : memref<256x128xf32, #tpu.memory_space<vmem>>, vector<256x128xf32>
      tpu.vector_store %arg7[%c0_11, %c0_12], %12 {strides = array<i32>} : memref<256x128xf32, #tpu.memory_space<vmem>>, vector<256x128xf32>,
    } else {
    }
    %c0 = arith.constant 0 : index
    %c0_1 = arith.constant 0 : index
    %3 = vector.load %arg7[%c0, %c0_1] : memref<256x128xf32, #tpu.memory_space<vmem>>, vector<256x128xf32>
    %c0_2 = arith.constant 0 : index
    %c0_3 = arith.constant 0 : index
    %4 = vector.load %arg3[%c0_2, %c0_3] : memref<256x512xf32, #tpu.memory_space<vmem>>, vector<256x512xf32>
    %c0_4 = arith.constant 0 : index
    %c0_5 = arith.constant 0 : index
    %5 = vector.load %arg4[%c0_4, %c0_5] : memref<512x128xf32, #tpu.memory_space<vmem>>, vector<512x128xf32>
    %cst = arith.constant dense<0.000000e+00> : vector<256x128xf32>
    %6 = tpu.matmul %4, %5, %cst {dimension_numbers = #tpu.dot_dimension_numbers<[1], [0], [0], [1], [0, 0, 1, 1], [], []>} : vector<256x512xf32>, vector<512x128xf32>, vector<256x128xf32> -> vector<256x128xf32>
    %7 = arith.addf %3, %6 : vector<256x128xf32>
    %c0_6 = arith.constant 0 : index
    %c0_7 = arith.constant 0 : index
    %8 = vector.load %arg7[%c0_6, %c0_7] : memref<256x128xf32, #tpu.memory_space<vmem>>, vector<256x128xf32>
    tpu.vector_store %arg7[%c0_6, %c0_7], %7 {strides = array<i32>} : memref<256x128xf32, #tpu.memory_space<vmem>>, vector<256x128xf32>,
    %c0_i32_8 = arith.constant 0 : i32
    %9 = arith.cmpi eq, %arg2, %c0_i32_8 : i32
    %10 = arith.extui %9 : i1 to i32
    %c0_i32_9 = arith.constant 0 : i32
    %11 = arith.cmpi ne, %10, %c0_i32_9 : i32
    scf.if %11 {
      %c0_10 = arith.constant 0 : index
      %c0_11 = arith.constant 0 : index
      %12 = vector.load %arg7[%c0_10, %c0_11] : memref<256x128xf32, #tpu.memory_space<vmem>>, vector<256x128xf32>
      %c0_12 = arith.constant 0 : index
      %c0_13 = arith.constant 0 : index
      %13 = vector.load %arg5[%c0_12, %c0_13] : memref<1x128xf32, #tpu.memory_space<vmem>>, vector<1x128xf32>
      %14 = vector.broadcast %13 : vector<1x128xf32> to vector<256x128xf32>
      %15 = arith.addf %12, %14 : vector<256x128xf32>
      %c0_14 = arith.constant 0 : index
      %c0_15 = arith.constant 0 : index
      %16 = vector.load %arg6[%c0_14, %c0_15] : memref<256x128xf32, #tpu.memory_space<vmem>>, vector<256x128xf32>
      tpu.vector_store %arg6[%c0_14, %c0_15], %15 {strides = array<i32>} : memref<256x128xf32, #tpu.memory_space<vmem>>, vector<256x128xf32>,
    } else {
    }
    return
  }
  func.func @transform_0(%arg0: i32, %arg1: i32, %arg2: i32) -> (i32, i32) {
    %c0_i32 = arith.constant 0 : i32
    return %arg0, %arg2 : i32, i32
  }
  func.func @transform_1(%arg0: i32, %arg1: i32, %arg2: i32) -> (i32, i32) {
    %c0_i32 = arith.constant 0 : i32
    return %arg2, %arg1 : i32, i32
  }
  func.func @transform_2(%arg0: i32, %arg1: i32, %arg2: i32) -> (i32, i32) {
    %c0_i32 = arith.constant 0 : i32
    %c0_i32_0 = arith.constant 0 : i32
    return %c0_i32, %arg1 : i32, i32
  }
  func.func @transform_3(%arg0: i32, %arg1: i32, %arg2: i32) -> (i32, i32) {
    %c0_i32 = arith.constant 0 : i32
    return %arg0, %arg1 : i32, i32
  }
}

</mosaic_0001>

<bundles_post_ra>
// kernel: tpu_custom_call.1
= control target key start
LH: loop header
LB: loop body
LE: loop exit
PB: predicated region body
PF: predicated region fallthrough
CT: control target
= control target key end

     0   :  { %s2322_s0 = inlined_call_operand.hbm [shape: f32[512,512], index: 0, kind: input, shape index: {}]   ;;  %s2323_s1 = inlined_call_operand.hbm [shape: f32[512,384], index: 1, kind: input, shape index: {}]   ;;  %s2324_s2 = inlined_call_operand.vmem [shape: f32[1,384], index: 2, kind: input, shape index: {}]   ;;  %s2325_s3 = inlined_call_operand.hbm [shape: f32[512,384], index: 3, kind: output, shape index: {}]  }
   0x1   :  { %2333 = sst [smem:[#allocation18_spill]] %s2322_s0 }
   0x2   :  { %2334 = sst [smem:[#allocation19_spill]] %s2324_s2 }
   0x3   :  { %2335 = sst [smem:[#allocation20_spill]] %s2325_s3 }
   0x4   :  { %8 = vsyncpa [#allocation4], 0 }
   0x5   :  { %10 = vsyncpa [#allocation4 + $0x1], 0 }
   0x6   :  { %11 = vsyncpa [#allocation7], 0 }
   0x7   :  { %13 = vsyncpa [#allocation7 + $0x1], 0 }
   0x8   :  { %14 = vsyncpa [#allocation5], 0 }
   0x9   :  { %16 = vsyncpa [#allocation5 + $0x1], 0  ;;  %s1701_s12 = smov 0   ;;  %s1703_s13 = smov 0  }
   0xa   :  { %s1705_s14 = smov 0   ;;  %s1707_s15 = smov 0  }
   0xb   :  { %s1709_s16 = smov 0   ;;  %s1711_s17 = smov 0  }
   0xc   :  { %s1713_s18 = smov 0   ;;  %s1715_s19 = smov 0  }
   0xd   :  { %s1717_s20 = smov 0   ;;  %s1719_s21 = smov 0  }
   0xe   :  { %s1721_s22 = smov 0   ;;  %s1723_s23 = smov 0  }
   0xf   :  { %s1725_s24 = smov 0   ;;  %s1727_s25 = smov 0  }
  0x10 LB: > { %2336 = sst [smem:[#allocation12_spill]] %s1655_s22  ;;  %s1299_s26 = sadd.s32 4294967295, %s1667_s25   ;;  %s1667_s25 = sphi %s1727_s25, %s22_s25   ;;  %s1663_s24 = sphi %s1725_s24, %s2378_s24   ;;  %s1659_s23 = sphi %s1723_s23, %s2377_s23   ;;  %s1655_s22 = sphi %s1721_s22, %s2364_s22   ;;  %s1651_s21 = sphi %s1719_s21, %s2376_s21   ;;  %s1647_s20 = sphi %s1717_s20, %s2375_s20   ;;  %s1643_s19 = sphi %s1715_s19, %s2374_s19   ;;  %s1639_s18 = sphi %s1713_s18, %s2373_s18   ;;  %s1635_s17 = sphi %s1711_s17, %s2372_s17   ;;  %s1631_s16 = sphi %s1709_s16, %s2371_s16   ;;  %s1627_s15 = sphi %s1707_s15, %s2370_s15   ;;  %s1623_s14 = sphi %s1705_s14, %s2369_s14   ;;  %s1619_s13 = sphi %s1703_s13, %s2368_s13   ;;  %s1615_s12 = sphi %s1701_s12, %s2367_s12  }
  0x11   : > { %2337 = sst [smem:[#allocation13_spill]] %s1663_s24  ;;  %p57_p0 = scmp.ne.s32.totalorder %s1647_s20, %s1643_s19 }
  0x12   : > { %p58_p1 = scmp.eq.s32.totalorder %s1667_s25, 0  ;;  %p63_p2 = scmp.ne.s32.totalorder %s1643_s19, %s1639_s18 }
  0x13   : > { %p1776_p3 = scmp.eq.s32.totalorder %s1299_s26, 0  ;;  %p1780_p4 = scmp.eq.s32.totalorder %s1299_s26, 5 }
  0x14   : > { %p59_p5 = por %p58_p1, %p57_p0  ;;  %p1340_p7 = scmp.lt.s32.totalorder %s1667_s25, 6 }
  0x15   : > { %p1788_p6 = por %p1776_p3, %p63_p2  ;;  %s169_s5 = sand.u32 1, %s1647_s20  }
  0x16   : > { %s1321_s6 = sshll.u32 %s1663_s24, 14  ;;  %s1303_s7 = sshll.u32 %s169_s5, 10 }
  0x17   : > { %s2341_s0 = sld [smem:[#allocation18_spill]]  ;;  %s173_s11 = scalar_lea.vmem [#allocation3], %s1303_s7 }
  0x18   : > { %s183_s18 = sshll.u32 %s173_s11, 4  ;;  %p1800_p8 = pnand %p1340_p7, %p59_p5  ;;  %s184_s18 = int_to_ptr.vmem [resolvable:$true] %s183_s18 }
  0x19   : > { %s170_s28 = scalar_lea.sflag [#allocation4], %s169_s5  ;;  %s1476_s27 = scalar_lea.vmem %s184_s18, 16384 }
  0x1a   : > { %p1465_p9 = pneg %p1800_p8  ;;  %p1477_p10 = scmp.ne.s32.totalorder %s184_s18, %s1476_s27 }
  0x1b   : > { %s1669_s3 = smov [#allocation3]  }
  0x1c   : > { %p1479_p11 = pnand %p1477_p10, %p1465_p9  ;;  %s1481_s22 = sshll.u32 %s1669_s3, 4  ;;  %s1482_s22 = int_to_ptr.vmem [resolvable:$false] %s1481_s22 }
  0x1d   : > { %s182_s10 = scalar_lea.hbm %s2341_s0, %s1321_s6  ;;  %s1483_s6 = scalar_lea.vmem %s1482_s22, 32768 }
  0x1e   : > { %p1480_p12 = pneg %p1479_p11  ;;  %p1484_p13 = scmp.lt.s32.totalorder %s184_s18, %s1482_s22 }
  0x1f   : > { %p1485_p0 = scmp.lt.s32.totalorder %s1483_s6, %s1476_s27 }
  0x21   : > { %p1486_p2 = por %p1485_p0, %p1484_p13 }
  0x23   : > { %p1487_p5 = pnand %p1486_p2, %p1480_p12 }
  0x25   : > { %1490 = shalt.err (!%p1487_p5)
}
  0x26   : > { %s1670_s7 = smov 512   ;;  %s1671_s3 = smov 32  }
  0x27   : > { %1332 = dma.hbm_to_vmem [thread:$0]  (!%p1800_p8), %s182_s10, 16384, %s184_s18, %s170_s28, %s1670_s7, %s1670_s7, %s1671_s3  }
  0x28   : > { %p1309_p9 = scmp.ge.s32.totalorder %s1667_s25, 1  ;;  %p220_p10 = scmp.lt.s32.totalorder %s1667_s25, 7 }
  0x29   : > { %s1300_s27 = sadd.s32 4294967294, %s1667_s25   ;;  %s37_s5 = sadd.s32 1, %s1659_s23 }
  0x2a   : > { %p1810_p11 = pnand %p1309_p9, %p220_p10  ;;  %s78_s8 = sadd.s32 1, %s1635_s17 }
  0x2b   : > { %p39_p12 = scmp.ge.s32.totalorder %s37_s5, 3  ;;  %p85_p13 = scmp.ne.s32.totalorder %s1635_s17, %s1631_s16 }
  0x2c   : > { %p91_p0 = scmp.ne.s32.totalorder %s1631_s16, %s1627_s15  ;;  %s132_s9 = sadd.s32 1, %s1623_s14 }
  0x2d   : > { %s2380_s5 = smov (%p39_p12, %s37_s5), 0  ;;  %s2345_s28 = sadd.s32 1, %s1663_s24 }
  0x2e   : > { %2344 = sst [smem:[#allocation14_spill]] %s2380_s5  ;;  %s2382_s28 = smov (!%p39_p12, %s2345_s28), %s1663_s24 }
  0x2f   : > { %s74_s10 = ssub.s32 %s1659_s23, %s2380_s5  ;;  %p1831_p8 = por %p85_p13, %p58_p1 }
  0x30   : > { %p43_p2 = scmp.ge.s32.totalorder %s2382_s28, 2  ;;  %p76_p5 = scmp.eq.s32.totalorder %s74_s10, 0 }
  0x31   : > { %p1837_p9 = por %p91_p0, %p1776_p3  ;;  %p142_p10 = scmp.ne.s32.totalorder %s1623_s14, %s1619_s13 }
  0x32   : > { %s2384_s28 = smov (%p43_p2, %s2382_s28), 0  ;;  %p148_p13 = scmp.ne.s32.totalorder %s1619_s13, %s1615_s12 }
  0x33   : > { %2348 = sst [smem:[#allocation15_spill]] %s2384_s28  ;;  %s45_s26 = ssub.s32 %s1663_s24, %s2384_s28 }
  0x34   : > { %s1846_s18 = scalar_select %p76_p5, %s1635_s17, %s78_s8  }
  0x35   : > { %p1852_p1 = por %p1780_p4, %p142_p10  ;;  %p48_p12 = scmp.eq.s32.totalorder %s45_s26, 0 }
  0x36   : > { %2349 = sst [smem:[#allocation16_spill]] %s1846_s18  ;;  %s129_s29 = sor.u32 %s74_s10, %s45_s26 }
  0x37   : > { %s2350_s6 = scalar_select %p1852_p1, 1, 0 }
  0x38   : > { %p130_p3 = scmp.eq.s32.totalorder %s129_s29, 0  ;;  %s2352_s7 = sadd.s32 1, %s1647_s20 }
  0x39   : > { %2351 = sst [smem:[#allocation17_spill]] %s2350_s6  ;;  %p149_p0 = scmp.eq.s32.totalorder %s1300_s27, 5 }
  0x3a   : > { %s1861_s3 = scalar_select %p48_p12, %s1647_s20, %s2352_s7  }
  0x3b   : > { %s1864_s0 = scalar_select %p130_p3, %s1623_s14, %s132_s9  }
  0x3c   : > { %s193_s8 = sand.u32 1, %s1635_s17   ;;  %p1867_p2 = por %p149_p0, %p148_p13 }
  0x3d   : > { %s1307_s5 = sshll.u32 %s193_s8, 9  ;;  %s1308_s28 = sshll.u32 %s1659_s23, 7 }
  0x3e   : > { %s2353_s30 = scalar_select %p1867_p2, 1, 0 }
  0x3f   : > { %s197_s24 = scalar_lea.vmem [#allocation6], %s1307_s5  ;;  %s205_s10 = scalar_lea.hbm %s2323_s1, %s1308_s28 }
  0x40   : > { %s206_s18 = sshll.u32 %s197_s24, 4  ;;  %p1879_p4 = pnand %p1340_p7, %p1831_p8  ;;  %s207_s18 = int_to_ptr.vmem [resolvable:$true] %s206_s18 }
  0x41   : > { %s194_s27 = scalar_lea.sflag [#allocation7], %s193_s8  ;;  %s1504_s26 = scalar_lea.vmem %s207_s18, 8192 }
  0x42   : > { %p1493_p5 = pneg %p1879_p4  ;;  %p1505_p10 = scmp.ne.s32.totalorder %s207_s18, %s1504_s26 }
  0x43   : > { %s1672_s24 = smov [#allocation6]  }
  0x44   : > { %p1507_p12 = pnand %p1505_p10, %p1493_p5  ;;  %s1509_s5 = sshll.u32 %s1672_s24, 4  ;;  %s1510_s5 = int_to_ptr.vmem [resolvable:$false] %s1509_s5 }
  0x45   : > { %s1511_s2 = scalar_lea.vmem %s1510_s5, 16384  ;;  %p1512_p13 = scmp.lt.s32.totalorder %s207_s18, %s1510_s5 }
  0x46   : > { %p1508_p3 = pneg %p1507_p12  ;;  %p1513_p0 = scmp.lt.s32.totalorder %s1511_s2, %s1504_s26 }
  0x48   : > { %p1514_p2 = por %p1513_p0, %p1512_p13 }
  0x4a   : > { %p1515_p1 = pnand %p1514_p2, %p1508_p3 }
  0x4c   : > { %1518 = shalt.err (!%p1515_p1)
}
  0x4d   : > { %s1673_s28 = smov 384   ;;  %s1674_s11 = smov 128  }
  0x4e   : > { %s1675_s6 = smov 8   ;;  %224 = sbr.rel (%p1810_p11) target bundleno = 490 (0x1ea), region = 32 }
  0x4f   : > { %1335 = dma.hbm_to_vmem [thread:$0]  (!%p1879_p4), %s205_s10, 8192, %s207_s18, %s194_s27, %s1673_s28, %s1674_s11, %s1675_s6  }
  0x50   : > { %s226_s29 = sand.u32 (!%p1810_p11), 1, %s1643_s19  }
  0x51   : > { %s1310_s7 = sshll.u32 (!%p1810_p11), %s226_s29, 10  ;;  %s227_s8 = scalar_lea.sflag (!%p1810_p11), [#allocation4], %s226_s29 }
  0x52   : > { %s1890_s24 = scalar_lea.vmem (!%p1810_p11), [#allocation3], %s1310_s7 }
  0x53   : > { %1602 = dma.done.wait (%p1788_p6), %s227_s8, 16384  }
  0x54   : > { %1604 = vsyncadd (%p1788_p6), %s227_s8, 4294950912  ;;  %s235_s26 = sand.u32 1, %s1631_s16  }
  0x55   : > { %s1311_s9 = sshll.u32 %s235_s26, 9  ;;  %s236_s18 = scalar_lea.sflag [#allocation7], %s235_s26 }
  0x56   : > { %s1897_s10 = scalar_lea.vmem [#allocation6], %s1311_s9 }
  0x57   : > { %1606 = dma.done.wait (%p1837_p9), %s236_s18, 8192  }
  0x58   : > { %1608 = vsyncadd (%p1837_p9), %s236_s18, 4294959104  ;;  %v1676_v0 = vmov 0.0   ;;  %v488_v1 = vld [vmem:[%s1897_s10 + $0x78] sm:$0xff]  ;;  %v487_v3 = vld [vmem:[%s1897_s10 + $0x70] sm:$0xff]  ;;  %p273_p6 = scmp.lt.s32.totalorder %s1651_s21, 2  ;;  %s267_s22 = sand.u32 1, %s1619_s13  }
  0x59   : > { %537 = vmatprep.subr.mxu0 %v1676_v0  ;;  %762 = vmatprep.subr.mxu1 %v1676_v0  ;;  %v520_v2 = vld [vmem:[%s1897_s10 + $0x178] sm:$0xff]  ;;  %v519_v4 = vld [vmem:[%s1897_s10 + $0x170] sm:$0xff]  ;;  %v486_v5 = vld [vmem:[%s1897_s10 + $0x68] sm:$0xff]  ;;  %s2355_s5 = sld [smem:[#allocation19_spill]]  ;;  %s1312_s28 = sshll.u32 %s267_s22, 8 }
  0x5a   : > { %538 = vmatpush1.msra.mxu0 %v488_v1  ;;  %763 = vmatpush1.msra.mxu1 %v520_v2  ;;  %v518_v6 = vld [vmem:[%s1897_s10 + $0x168] sm:$0xff]  ;;  %v485_v7 = vld [vmem:[%s1897_s10 + $0x60] sm:$0xff]  ;;  %v484_v9 = vld [vmem:[%s1897_s10 + $0x58] sm:$0xff]  ;;  %s274_s4 = scalar_select %p273_p6, %s1651_s21, 2 }
  0x5b   : > { %539 = vmatprep.subr.mxu0 %v1676_v0  ;;  %764 = vmatprep.subr.mxu1 %v1676_v0  ;;  %v517_v8 = vld [vmem:[%s1897_s10 + $0x160] sm:$0xff]  ;;  %v516_v10 = vld [vmem:[%s1897_s10 + $0x158] sm:$0xff]  ;;  %v483_v11 = vld [vmem:[%s1897_s10 + $0x50] sm:$0xff]  ;;  %s2170_s11 = scalar_lea.vmem [#allocation8], %s1312_s28  ;;  %s2356_s6 = sld [smem:[#allocation12_spill]] }
  0x5c   : > { %540 = vmatpush1.msra.mxu0 %v487_v3  ;;  %765 = vmatpush1.msra.mxu1 %v519_v4  ;;  %v515_v12 = vld [vmem:[%s1897_s10 + $0x150] sm:$0xff]  ;;  %v482_v13 = vld [vmem:[%s1897_s10 + $0x48] sm:$0xff]  ;;  %v481_v15 = vld [vmem:[%s1897_s10 + $0x40] sm:$0xff]  ;;  %s1173_s26 = sshll.u32 %s2170_s11, 4  ;;  %s2247_s15 = scalar_lea.sflag [#allocation5], %s267_s22  ;;  %s2241_s26 = int_to_ptr.vmem [resolvable:$true] %s1173_s26 }
  0x5d   : > { %541 = vmatprep.subr.mxu0 %v1676_v0  ;;  %766 = vmatprep.subr.mxu1 %v1676_v0  ;;  %v514_v14 = vld [vmem:[%s1897_s10 + $0x148] sm:$0xff]  ;;  %v513_v16 = vld [vmem:[%s1897_s10 + $0x140] sm:$0xff]  ;;  %v480_v17 = vld [vmem:[%s1897_s10 + $0x38] sm:$0xff]  ;;  %s1519_s27 = scalar_lea.vmem %s2241_s26, 4096 }
  0x5e   : > { %542 = vmatpush1.msra.mxu0 %v486_v5  ;;  %767 = vmatpush1.msra.mxu1 %v518_v6  ;;  %v512_v18 = vld [vmem:[%s1897_s10 + $0x138] sm:$0xff]  ;;  %v479_v19 = vld [vmem:[%s1897_s10 + $0x30] sm:$0xff]  ;;  %v478_v21 = vld [vmem:[%s1897_s10 + $0x28] sm:$0xff]  ;;  %p1520_p7 = scmp.ne.s32.totalorder %s2241_s26, %s1519_s27 }
  0x5f   : > { %543 = vmatprep.subr.mxu0 %v1676_v0  ;;  %768 = vmatprep.subr.mxu1 %v1676_v0  ;;  %v511_v20 = vld [vmem:[%s1897_s10 + $0x130] sm:$0xff]  ;;  %v510_v22 = vld [vmem:[%s1897_s10 + $0x128] sm:$0xff]  ;;  %v477_v23 = vld [vmem:[%s1897_s10 + $0x20] sm:$0xff]  ;;  %s275_s2 = scalar_lea.vmem %s2355_s5, %s274_s4  ;;  %s1677_s5 = smov [#allocation8]  }
  0x60   : > { %544 = vmatpush1.msra.mxu0 %v485_v7  ;;  %769 = vmatpush1.msra.mxu1 %v517_v8  ;;  %v509_v24 = vld [vmem:[%s1897_s10 + $0x120] sm:$0xff]  ;;  %v476_v25 = vld [vmem:[%s1897_s10 + $0x18] sm:$0xff]  ;;  %v475_v27 = vld [vmem:[%s1897_s10 + $0x10] sm:$0xff] }
  0x61   : > { %545 = vmatprep.subr.mxu0 %v1676_v0  ;;  %770 = vmatprep.subr.mxu1 %v1676_v0  ;;  %v508_v26 = vld [vmem:[%s1897_s10 + $0x118] sm:$0xff]  ;;  %v507_v28 = vld [vmem:[%s1897_s10 + $0x110] sm:$0xff]  ;;  %v474_v29 = vld [vmem:[%s1897_s10 + $0x8] sm:$0xff]  ;;  %s1322_s29 = smul.u32 96, %s2356_s6 }
  0x62   : > { %546 = vmatpush1.msra.mxu0 %v484_v9  ;;  %771 = vmatpush1.msra.mxu1 %v516_v10  ;;  %v506_v30 = vld [vmem:[%s1897_s10 + $0x108] sm:$0xff]  ;;  %v473_v31 = vld [vmem:[%s1897_s10] sm:$0xff]  ;;  %v504_v33 = vld [vmem:[%s1897_s10 + $0xf8] sm:$0xff] }
  0x63   : > { %547 = vmatprep.subr.mxu0 %v1676_v0  ;;  %772 = vmatprep.subr.mxu1 %v1676_v0  ;;  %v505_v32 = vld [vmem:[%s1897_s10 + $0x100] sm:$0xff]  ;;  %v536_v34 = vld [vmem:[%s1897_s10 + $0x1f8] sm:$0xff]  ;;  %v503_v35 = vld [vmem:[%s1897_s10 + $0xf0] sm:$0xff]  ;;  %s1170_s7 = sadd.s32 %s1651_s21, %s1322_s29  ;;  %s2358_s21 = sld [smem:[#allocation20_spill]] }
  0x64   : > { %548 = vmatpush1.msra.mxu0 %v483_v11  ;;  %773 = vmatpush1.msra.mxu1 %v515_v12  ;;  %v535_v36 = vld [vmem:[%s1897_s10 + $0x1f0] sm:$0xff]  ;;  %v502_v37 = vld [vmem:[%s1897_s10 + $0xe8] sm:$0xff]  ;;  %v501_v39 = vld [vmem:[%s1897_s10 + $0xe0] sm:$0xff]  ;;  %s1317_s8 = sshll.u32 %s1170_s7, 7 }
  0x65   : > { %549 = vmatprep.subr.mxu0 %v1676_v0  ;;  %774 = vmatprep.subr.mxu1 %v1676_v0  ;;  %v534_v38 = vld [vmem:[%s1897_s10 + $0x1e8] sm:$0xff]  ;;  %v533_v40 = vld [vmem:[%s1897_s10 + $0x1e0] sm:$0xff]  ;;  %v500_v41 = vld [vmem:[%s1897_s10 + $0xd8] sm:$0xff] }
  0x66   : > { %550 = vmatpush1.msra.mxu0 %v482_v13  ;;  %775 = vmatpush1.msra.mxu1 %v514_v14  ;;  %v532_v42 = vld [vmem:[%s1897_s10 + $0x1d8] sm:$0xff]  ;;  %v499_v43 = vld [vmem:[%s1897_s10 + $0xd0] sm:$0xff]  ;;  %v498_v45 = vld [vmem:[%s1897_s10 + $0xc8] sm:$0xff] }
  0x67   : > { %551 = vmatprep.subr.mxu0 %v1676_v0  ;;  %776 = vmatprep.subr.mxu1 %v1676_v0  ;;  %v531_v44 = vld [vmem:[%s1897_s10 + $0x1d0] sm:$0xff]  ;;  %v530_v46 = vld [vmem:[%s1897_s10 + $0x1c8] sm:$0xff]  ;;  %v497_v47 = vld [vmem:[%s1897_s10 + $0xc0] sm:$0xff] }
  0x68   : > { %552 = vmatpush1.msra.mxu0 %v481_v15  ;;  %777 = vmatpush1.msra.mxu1 %v513_v16  ;;  %v529_v48 = vld [vmem:[%s1897_s10 + $0x1c0] sm:$0xff]  ;;  %v496_v49 = vld [vmem:[%s1897_s10 + $0xb8] sm:$0xff]  ;;  %v495_v51 = vld [vmem:[%s1897_s10 + $0xb0] sm:$0xff] }
  0x69   : > { %553 = vmatprep.subr.mxu0 %v1676_v0  ;;  %778 = vmatprep.subr.mxu1 %v1676_v0  ;;  %v528_v50 = vld [vmem:[%s1897_s10 + $0x1b8] sm:$0xff]  ;;  %v527_v52 = vld [vmem:[%s1897_s10 + $0x1b0] sm:$0xff]  ;;  %v494_v53 = vld [vmem:[%s1897_s10 + $0xa8] sm:$0xff]  ;;  %s2239_s4 = scalar_lea.hbm %s2358_s21, %s1317_s8 }
  0x6a   : > { %554 = vmatpush1.msra.mxu0 %v480_v17  ;;  %779 = vmatpush1.msra.mxu1 %v512_v18  ;;  %v526_v54 = vld [vmem:[%s1897_s10 + $0x1a8] sm:$0xff]  ;;  %v493_v55 = vld [vmem:[%s1897_s10 + $0xa0] sm:$0xff]  ;;  %v492_v57 = vld [vmem:[%s1897_s10 + $0x98] sm:$0xff] }
  0x6b   : > { %555 = vmatprep.subr.mxu0 %v1676_v0  ;;  %780 = vmatprep.subr.mxu1 %v1676_v0  ;;  %v525_v56 = vld [vmem:[%s1897_s10 + $0x1a0] sm:$0xff]  ;;  %v524_v58 = vld [vmem:[%s1897_s10 + $0x198] sm:$0xff]  ;;  %v491_v59 = vld [vmem:[%s1897_s10 + $0x90] sm:$0xff] }
  0x6c   : > { %556 = vmatpush1.msra.mxu0 %v479_v19  ;;  %781 = vmatpush1.msra.mxu1 %v511_v20  ;;  %v523_v60 = vld [vmem:[%s1897_s10 + $0x190] sm:$0xff]  ;;  %v490_v61 = vld [vmem:[%s1897_s10 + $0x88] sm:$0xff]  ;;  %v489_v63 = vld [vmem:[%s1897_s10 + $0x80] sm:$0xff] }
  0x6d   : > { %557 = vmatprep.subr.mxu0 %v1676_v0  ;;  %782 = vmatprep.subr.mxu1 %v1676_v0  ;;  %v522_v62 = vld [vmem:[%s1897_s10 + $0x188] sm:$0xff]  ;;  %v521_v2 = vld [vmem:[%s1897_s10 + $0x180] sm:$0xff]  ;;  %v348_v3 = vld [vmem:[%s1890_s24 + $0x18] sm:$0xff]  ;;  %s2359_s10 = smov %s2358_s21 }
  0x6e   : > { %558 = vmatpush1.msra.mxu0 %v478_v21  ;;  %783 = vmatpush1.msra.mxu1 %v510_v22  ;;  %v346_v1 = vld [vmem:[%s1890_s24 + $0x8] sm:$0xff]  ;;  %v345_v4 = vld [vmem:[%s1890_s24] sm:$0xff]  ;;  %v347_v5 = vld [vmem:[%s1890_s24 + $0x10] sm:$0xff] }
  0x6f   : > { %559 = vmatprep.subr.mxu0 %v1676_v0  ;;  %784 = vmatprep.subr.mxu1 %v1676_v0  ;;  %v350_v6 = vld [vmem:[%s1890_s24 + $0x28] sm:$0xff]  ;;  %v352_v7 = vld [vmem:[%s1890_s24 + $0x38] sm:$0xff]  ;;  %v349_v8 = vld [vmem:[%s1890_s24 + $0x20] sm:$0xff] }
  0x70   : > { %560 = vmatpush1.msra.mxu0 %v477_v23  ;;  %785 = vmatpush1.msra.mxu1 %v509_v24  ;;  %v354_v9 = vld [vmem:[%s1890_s24 + $0x48] sm:$0xff]  ;;  %v356_v10 = vld [vmem:[%s1890_s24 + $0x58] sm:$0xff]  ;;  %v353_v11 = vld [vmem:[%s1890_s24 + $0x40] sm:$0xff] }
  0x71   : > { %561 = vmatprep.subr.mxu0 %v1676_v0  ;;  %786 = vmatprep.subr.mxu1 %v1676_v0  ;;  %v355_v12 = vld [vmem:[%s1890_s24 + $0x50] sm:$0xff]  ;;  %v358_v13 = vld [vmem:[%s1890_s24 + $0x68] sm:$0xff]  ;;  %v360_v14 = vld [vmem:[%s1890_s24 + $0x78] sm:$0xff] }
  0x72   : > { %562 = vmatpush1.msra.mxu0 %v476_v25  ;;  %787 = vmatpush1.msra.mxu1 %v508_v26  ;;  %v357_v15 = vld [vmem:[%s1890_s24 + $0x60] sm:$0xff]  ;;  %v359_v16 = vld [vmem:[%s1890_s24 + $0x70] sm:$0xff]  ;;  %v362_v17 = vld [vmem:[%s1890_s24 + $0x88] sm:$0xff] }
  0x73   : > { %563 = vmatprep.subr.mxu0 %v1676_v0  ;;  %788 = vmatprep.subr.mxu1 %v1676_v0  ;;  %v364_v18 = vld [vmem:[%s1890_s24 + $0x98] sm:$0xff]  ;;  %v361_v19 = vld [vmem:[%s1890_s24 + $0x80] sm:$0xff]  ;;  %v363_v20 = vld [vmem:[%s1890_s24 + $0x90] sm:$0xff] }
  0x74   : > { %564 = vmatpush1.msra.mxu0 %v475_v27  ;;  %789 = vmatpush1.msra.mxu1 %v507_v28  ;;  %v366_v21 = vld [vmem:[%s1890_s24 + $0xa8] sm:$0xff]  ;;  %v368_v22 = vld [vmem:[%s1890_s24 + $0xb8] sm:$0xff]  ;;  %v365_v23 = vld [vmem:[%s1890_s24 + $0xa0] sm:$0xff] }
  0x75   : > { %565 = vmatprep.subr.mxu0 %v1676_v0  ;;  %790 = vmatprep.subr.mxu1 %v1676_v0  ;;  %v367_v24 = vld [vmem:[%s1890_s24 + $0xb0] sm:$0xff]  ;;  %v370_v25 = vld [vmem:[%s1890_s24 + $0xc8] sm:$0xff]  ;;  %v372_v26 = vld [vmem:[%s1890_s24 + $0xd8] sm:$0xff] }
  0x76   : > { %566 = vmatpush1.msra.mxu0 %v474_v29  ;;  %791 = vmatpush1.msra.mxu1 %v506_v30  ;;  %v369_v27 = vld [vmem:[%s1890_s24 + $0xc0] sm:$0xff]  ;;  %v371_v28 = vld [vmem:[%s1890_s24 + $0xd0] sm:$0xff]  ;;  %v374_v29 = vld [vmem:[%s1890_s24 + $0xe8] sm:$0xff] }
  0x77   : > { %567 = vmatprep.subr.mxu0 %v1676_v0  ;;  %792 = vmatprep.subr.mxu1 %v1676_v0  ;;  %v376_v30 = vld [vmem:[%s1890_s24 + $0xf8] sm:$0xff] }
  0x78   : > { %568 = vmatpush1.msra.mxu0 %v473_v31  ;;  %793 = vmatpush1.msra.mxu1 %v505_v32  ;;  %v373_v31 = vld [vmem:[%s1890_s24 + $0xe0] sm:$0xff]  ;;  %v375_v32 = vld [vmem:[%s1890_s24 + $0xf0] sm:$0xff] }
  0x79   : > { %569 = vmatprep.subr.mxu0 %v1676_v0  ;;  %794 = vmatprep.subr.mxu1 %v1676_v0 }
  0x7a   : > { %570 = vmatpush2.msra.mxu0 %v504_v33  ;;  %795 = vmatpush2.msra.mxu1 %v536_v34  ;;  %v378_v33 = vld [vmem:[%s1890_s24 + $0x108] sm:$0xff]  ;;  %v380_v34 = vld [vmem:[%s1890_s24 + $0x118] sm:$0xff] }
  0x7b   : > { %571 = vmatprep.subr.mxu0 %v1676_v0  ;;  %796 = vmatprep.subr.mxu1 %v1676_v0 }
  0x7c   : > { %572 = vmatpush2.msra.mxu0 %v503_v35  ;;  %797 = vmatpush2.msra.mxu1 %v535_v36  ;;  %v377_v35 = vld [vmem:[%s1890_s24 + $0x100] sm:$0xff]  ;;  %v379_v36 = vld [vmem:[%s1890_s24 + $0x110] sm:$0xff] }
  0x7d   : > { %573 = vmatprep.subr.mxu0 %v1676_v0  ;;  %798 = vmatprep.subr.mxu1 %v1676_v0 }
  0x7e   : > { %574 = vmatpush2.msra.mxu0 %v502_v37  ;;  %799 = vmatpush2.msra.mxu1 %v534_v38  ;;  %v382_v37 = vld [vmem:[%s1890_s24 + $0x128] sm:$0xff]  ;;  %v384_v38 = vld [vmem:[%s1890_s24 + $0x138] sm:$0xff] }
  0x7f   : > { %575 = vmatprep.subr.mxu0 %v1676_v0  ;;  %800 = vmatprep.subr.mxu1 %v1676_v0 }
  0x80   : > { %576 = vmatpush2.msra.mxu0 %v501_v39  ;;  %801 = vmatpush2.msra.mxu1 %v533_v40  ;;  %v381_v39 = vld [vmem:[%s1890_s24 + $0x120] sm:$0xff]  ;;  %v383_v40 = vld [vmem:[%s1890_s24 + $0x130] sm:$0xff] }
  0x81   : > { %577 = vmatprep.subr.mxu0 %v1676_v0  ;;  %802 = vmatprep.subr.mxu1 %v1676_v0 }
  0x82   : > { %578 = vmatpush2.msra.mxu0 %v500_v41  ;;  %803 = vmatpush2.msra.mxu1 %v532_v42  ;;  %v386_v41 = vld [vmem:[%s1890_s24 + $0x148] sm:$0xff]  ;;  %v388_v42 = vld [vmem:[%s1890_s24 + $0x158] sm:$0xff] }
  0x83   : > { %579 = vmatprep.subr.mxu0 %v1676_v0  ;;  %804 = vmatprep.subr.mxu1 %v1676_v0 }
  0x84   : > { %580 = vmatpush2.msra.mxu0 %v499_v43  ;;  %805 = vmatpush2.msra.mxu1 %v531_v44  ;;  %v385_v43 = vld [vmem:[%s1890_s24 + $0x140] sm:$0xff]  ;;  %v387_v44 = vld [vmem:[%s1890_s24 + $0x150] sm:$0xff] }
  0x85   : > { %581 = vmatprep.subr.mxu0 %v1676_v0  ;;  %806 = vmatprep.subr.mxu1 %v1676_v0 }
  0x86   : > { %582 = vmatpush2.msra.mxu0 %v498_v45  ;;  %807 = vmatpush2.msra.mxu1 %v530_v46  ;;  %v390_v45 = vld [vmem:[%s1890_s24 + $0x168] sm:$0xff]  ;;  %v392_v46 = vld [vmem:[%s1890_s24 + $0x178] sm:$0xff] }
  0x87   : > { %583 = vmatprep.subr.mxu0 %v1676_v0  ;;  %808 = vmatprep.subr.mxu1 %v1676_v0 }
  0x88   : > { %584 = vmatpush2.msra.mxu0 %v497_v47  ;;  %809 = vmatpush2.msra.mxu1 %v529_v48  ;;  %v389_v47 = vld [vmem:[%s1890_s24 + $0x160] sm:$0xff]  ;;  %v391_v48 = vld [vmem:[%s1890_s24 + $0x170] sm:$0xff] }
  0x89   : > { %585 = vmatprep.subr.mxu0 %v1676_v0  ;;  %810 = vmatprep.subr.mxu1 %v1676_v0 }
  0x8a   : > { %586 = vmatpush2.msra.mxu0 %v496_v49  ;;  %811 = vmatpush2.msra.mxu1 %v528_v50  ;;  %v394_v49 = vld [vmem:[%s1890_s24 + $0x188] sm:$0xff]  ;;  %v396_v50 = vld [vmem:[%s1890_s24 + $0x198] sm:$0xff] }
  0x8b   : > { %587 = vmatprep.subr.mxu0 %v1676_v0  ;;  %812 = vmatprep.subr.mxu1 %v1676_v0 }
  0x8c   : > { %588 = vmatpush2.msra.mxu0 %v495_v51  ;;  %813 = vmatpush2.msra.mxu1 %v527_v52  ;;  %v393_v51 = vld [vmem:[%s1890_s24 + $0x180] sm:$0xff]  ;;  %v395_v52 = vld [vmem:[%s1890_s24 + $0x190] sm:$0xff] }
  0x8d   : > { %589 = vmatprep.subr.mxu0 %v1676_v0  ;;  %814 = vmatprep.subr.mxu1 %v1676_v0 }
  0x8e   : > { %590 = vmatpush2.msra.mxu0 %v494_v53  ;;  %815 = vmatpush2.msra.mxu1 %v526_v54  ;;  %v398_v53 = vld [vmem:[%s1890_s24 + $0x1a8] sm:$0xff]  ;;  %v400_v54 = vld [vmem:[%s1890_s24 + $0x1b8] sm:$0xff] }
  0x8f   : > { %591 = vmatprep.subr.mxu0 %v1676_v0  ;;  %816 = vmatprep.subr.mxu1 %v1676_v0 }
  0x90   : > { %592 = vmatpush2.msra.mxu0 %v493_v55  ;;  %817 = vmatpush2.msra.mxu1 %v525_v56  ;;  %v397_v55 = vld [vmem:[%s1890_s24 + $0x1a0] sm:$0xff]  ;;  %v399_v56 = vld [vmem:[%s1890_s24 + $0x1b0] sm:$0xff] }
  0x91   : > { %593 = vmatprep.subr.mxu0 %v1676_v0  ;;  %818 = vmatprep.subr.mxu1 %v1676_v0 }
  0x92   : > { %594 = vmatpush2.msra.mxu0 %v492_v57  ;;  %819 = vmatpush2.msra.mxu1 %v524_v58  ;;  %v402_v57 = vld [vmem:[%s1890_s24 + $0x1c8] sm:$0xff]  ;;  %v404_v58 = vld [vmem:[%s1890_s24 + $0x1d8] sm:$0xff] }
  0x93   : > { %595 = vmatprep.subr.mxu0 %v1676_v0  ;;  %820 = vmatprep.subr.mxu1 %v1676_v0 }
  0x94   : > { %596 = vmatpush2.msra.mxu0 %v491_v59  ;;  %821 = vmatpush2.msra.mxu1 %v523_v60  ;;  %v401_v59 = vld [vmem:[%s1890_s24 + $0x1c0] sm:$0xff]  ;;  %v403_v60 = vld [vmem:[%s1890_s24 + $0x1d0] sm:$0xff] }
  0x95   : > { %597 = vmatprep.subr.mxu0 %v1676_v0  ;;  %822 = vmatprep.subr.mxu1 %v1676_v0 }
  0x96   : > { %598 = vmatpush2.msra.mxu0 %v490_v61  ;;  %823 = vmatpush2.msra.mxu1 %v522_v62  ;;  %v406_v61 = vld [vmem:[%s1890_s24 + $0x1e8] sm:$0xff]  ;;  %v408_v62 = vld [vmem:[%s1890_s24 + $0x1f8] sm:$0xff] }
  0x97   : > { %599 = vmatprep.subr.mxu0 %v1676_v0  ;;  %824 = vmatprep.subr.mxu1 %v1676_v0  ;;  %v351_v0 = vld [vmem:[%s1890_s24 + $0x30] sm:$0xff] }
  0x98   : > { %600 = vmatpush2.msra.mxu0 %v489_v63  ;;  %601 = vmatprep.mubr.f32.mxu0 %v346_v1  ;;  %v405_v63 = vld [vmem:[%s1890_s24 + $0x1e0] sm:$0xff]  ;;  %v407_v1 = vld [vmem:[%s1890_s24 + $0x1f0] sm:$0xff] }
  0x99   : > { %825 = vmatpush2.msra.mxu1 %v521_v2  ;;  %826 = vmatprep.mubr.f32.mxu1 %v348_v3  ;;  %v410_v2 = vld [vmem:[%s1890_s24 + $0x208] sm:$0xff]  ;;  %v412_v3 = vld [vmem:[%s1890_s24 + $0x218] sm:$0xff] }
  0x9a   : > { %602 = vmatmul.mubr.f32.vlgmr.msra.gmra.mxu0 %v345_v4  ;;  %827 = vmatmul.mubr.f32.vlgmr.msra.gmra.mxu1 %v347_v5  ;;  %v409_v4 = vld [vmem:[%s1890_s24 + $0x200] sm:$0xff]  ;;  %v411_v5 = vld [vmem:[%s1890_s24 + $0x210] sm:$0xff] }
  0x9b   : > { %606 = vmatprep.mubr.f32.mxu0 %v350_v6  ;;  %831 = vmatprep.mubr.f32.mxu1 %v352_v7  ;;  %v414_v6 = vld [vmem:[%s1890_s24 + $0x228] sm:$0xff]  ;;  %v416_v7 = vld [vmem:[%s1890_s24 + $0x238] sm:$0xff] }
  0x9e   : > { %607 = vmatmul.mubr.f32.gmra.mxu0 %v349_v8  ;;  %832 = vmatmul.mubr.f32.gmra.mxu1 %v351_v0  ;;  %v413_v8 = vld [vmem:[%s1890_s24 + $0x220] sm:$0xff]  ;;  %v415_v0 = vld [vmem:[%s1890_s24 + $0x230] sm:$0xff] }
  0x9f   : > { %611 = vmatprep.mubr.f32.mxu0 %v354_v9  ;;  %836 = vmatprep.mubr.f32.mxu1 %v356_v10  ;;  %v418_v9 = vld [vmem:[%s1890_s24 + $0x248] sm:$0xff]  ;;  %v420_v10 = vld [vmem:[%s1890_s24 + $0x258] sm:$0xff] }
  0xa2   : > { %612 = vmatmul.mubr.f32.gmra.mxu0 %v353_v11  ;;  %837 = vmatmul.mubr.f32.gmra.mxu1 %v355_v12  ;;  %v417_v11 = vld [vmem:[%s1890_s24 + $0x240] sm:$0xff]  ;;  %v419_v12 = vld [vmem:[%s1890_s24 + $0x250] sm:$0xff] }
  0xa3   : > { %616 = vmatprep.mubr.f32.mxu0 %v358_v13  ;;  %841 = vmatprep.mubr.f32.mxu1 %v360_v14  ;;  %v422_v13 = vld [vmem:[%s1890_s24 + $0x268] sm:$0xff]  ;;  %v424_v14 = vld [vmem:[%s1890_s24 + $0x278] sm:$0xff] }
  0xa6   : > { %617 = vmatmul.mubr.f32.gmra.mxu0 %v357_v15  ;;  %842 = vmatmul.mubr.f32.gmra.mxu1 %v359_v16  ;;  %v421_v15 = vld [vmem:[%s1890_s24 + $0x260] sm:$0xff]  ;;  %v423_v16 = vld [vmem:[%s1890_s24 + $0x270] sm:$0xff] }
  0xa7   : > { %621 = vmatprep.mubr.f32.mxu0 %v362_v17  ;;  %846 = vmatprep.mubr.f32.mxu1 %v364_v18  ;;  %v426_v17 = vld [vmem:[%s1890_s24 + $0x288] sm:$0xff]  ;;  %v428_v18 = vld [vmem:[%s1890_s24 + $0x298] sm:$0xff] }
  0xaa   : > { %622 = vmatmul.mubr.f32.gmra.mxu0 %v361_v19  ;;  %847 = vmatmul.mubr.f32.gmra.mxu1 %v363_v20  ;;  %v425_v19 = vld [vmem:[%s1890_s24 + $0x280] sm:$0xff]  ;;  %v427_v20 = vld [vmem:[%s1890_s24 + $0x290] sm:$0xff] }
  0xab   : > { %626 = vmatprep.mubr.f32.mxu0 %v366_v21  ;;  %851 = vmatprep.mubr.f32.mxu1 %v368_v22  ;;  %v430_v21 = vld [vmem:[%s1890_s24 + $0x2a8] sm:$0xff]  ;;  %v432_v22 = vld [vmem:[%s1890_s24 + $0x2b8] sm:$0xff] }
  0xae   : > { %627 = vmatmul.mubr.f32.gmra.mxu0 %v365_v23  ;;  %852 = vmatmul.mubr.f32.gmra.mxu1 %v367_v24  ;;  %v429_v23 = vld [vmem:[%s1890_s24 + $0x2a0] sm:$0xff]  ;;  %v431_v24 = vld [vmem:[%s1890_s24 + $0x2b0] sm:$0xff] }
  0xaf   : > { %631 = vmatprep.mubr.f32.mxu0 %v370_v25  ;;  %856 = vmatprep.mubr.f32.mxu1 %v372_v26  ;;  %v434_v25 = vld [vmem:[%s1890_s24 + $0x2c8] sm:$0xff]  ;;  %v436_v26 = vld [vmem:[%s1890_s24 + $0x2d8] sm:$0xff] }
  0xb2   : > { %632 = vmatmul.mubr.f32.gmra.mxu0 %v369_v27  ;;  %857 = vmatmul.mubr.f32.gmra.mxu1 %v371_v28  ;;  %v433_v27 = vld [vmem:[%s1890_s24 + $0x2c0] sm:$0xff]  ;;  %v435_v28 = vld [vmem:[%s1890_s24 + $0x2d0] sm:$0xff] }
  0xb3   : > { %636 = vmatprep.mubr.f32.mxu0 %v374_v29  ;;  %861 = vmatprep.mubr.f32.mxu1 %v376_v30  ;;  %v438_v29 = vld [vmem:[%s1890_s24 + $0x2e8] sm:$0xff]  ;;  %v440_v30 = vld [vmem:[%s1890_s24 + $0x2f8] sm:$0xff] }
  0xb6   : > { %637 = vmatmul.mubr.f32.gmra.mxu0 %v373_v31  ;;  %862 = vmatmul.mubr.f32.gmra.mxu1 %v375_v32  ;;  %v437_v31 = vld [vmem:[%s1890_s24 + $0x2e0] sm:$0xff]  ;;  %v439_v32 = vld [vmem:[%s1890_s24 + $0x2f0] sm:$0xff] }
  0xb7   : > { %641 = vmatprep.mubr.f32.mxu0 %v378_v33  ;;  %866 = vmatprep.mubr.f32.mxu1 %v380_v34  ;;  %v442_v33 = vld [vmem:[%s1890_s24 + $0x308] sm:$0xff]  ;;  %v444_v34 = vld [vmem:[%s1890_s24 + $0x318] sm:$0xff] }
  0xba   : > { %642 = vmatmul.mubr.f32.gmra.mxu0 %v377_v35  ;;  %867 = vmatmul.mubr.f32.gmra.mxu1 %v379_v36  ;;  %v441_v35 = vld [vmem:[%s1890_s24 + $0x300] sm:$0xff]  ;;  %v443_v36 = vld [vmem:[%s1890_s24 + $0x310] sm:$0xff] }
  0xbb   : > { %646 = vmatprep.mubr.f32.mxu0 %v382_v37  ;;  %871 = vmatprep.mubr.f32.mxu1 %v384_v38  ;;  %v446_v37 = vld [vmem:[%s1890_s24 + $0x328] sm:$0xff]  ;;  %v448_v38 = vld [vmem:[%s1890_s24 + $0x338] sm:$0xff] }
  0xbe   : > { %647 = vmatmul.mubr.f32.gmra.mxu0 %v381_v39  ;;  %872 = vmatmul.mubr.f32.gmra.mxu1 %v383_v40  ;;  %v445_v39 = vld [vmem:[%s1890_s24 + $0x320] sm:$0xff]  ;;  %v447_v40 = vld [vmem:[%s1890_s24 + $0x330] sm:$0xff] }
  0xbf   : > { %651 = vmatprep.mubr.f32.mxu0 %v386_v41  ;;  %876 = vmatprep.mubr.f32.mxu1 %v388_v42  ;;  %v450_v41 = vld [vmem:[%s1890_s24 + $0x348] sm:$0xff]  ;;  %v452_v42 = vld [vmem:[%s1890_s24 + $0x358] sm:$0xff] }
  0xc2   : > { %652 = vmatmul.mubr.f32.gmra.mxu0 %v385_v43  ;;  %877 = vmatmul.mubr.f32.gmra.mxu1 %v387_v44  ;;  %v449_v43 = vld [vmem:[%s1890_s24 + $0x340] sm:$0xff]  ;;  %v451_v44 = vld [vmem:[%s1890_s24 + $0x350] sm:$0xff] }
  0xc3   : > { %656 = vmatprep.mubr.f32.mxu0 %v390_v45  ;;  %881 = vmatprep.mubr.f32.mxu1 %v392_v46  ;;  %v454_v45 = vld [vmem:[%s1890_s24 + $0x368] sm:$0xff]  ;;  %v456_v46 = vld [vmem:[%s1890_s24 + $0x378] sm:$0xff] }
  0xc6   : > { %657 = vmatmul.mubr.f32.gmra.mxu0 %v389_v47  ;;  %882 = vmatmul.mubr.f32.gmra.mxu1 %v391_v48  ;;  %v453_v47 = vld [vmem:[%s1890_s24 + $0x360] sm:$0xff]  ;;  %v455_v48 = vld [vmem:[%s1890_s24 + $0x370] sm:$0xff] }
  0xc7   : > { %661 = vmatprep.mubr.f32.mxu0 %v394_v49  ;;  %886 = vmatprep.mubr.f32.mxu1 %v396_v50  ;;  %v458_v49 = vld [vmem:[%s1890_s24 + $0x388] sm:$0xff]  ;;  %v460_v50 = vld [vmem:[%s1890_s24 + $0x398] sm:$0xff] }
  0xca   : > { %662 = vmatmul.mubr.f32.gmra.mxu0 %v393_v51  ;;  %887 = vmatmul.mubr.f32.gmra.mxu1 %v395_v52  ;;  %v457_v51 = vld [vmem:[%s1890_s24 + $0x380] sm:$0xff]  ;;  %v459_v52 = vld [vmem:[%s1890_s24 + $0x390] sm:$0xff] }
  0xcb   : > { %666 = vmatprep.mubr.f32.mxu0 %v398_v53  ;;  %891 = vmatprep.mubr.f32.mxu1 %v400_v54  ;;  %v462_v53 = vld [vmem:[%s1890_s24 + $0x3a8] sm:$0xff]  ;;  %v464_v54 = vld [vmem:[%s1890_s24 + $0x3b8] sm:$0xff] }
  0xce   : > { %667 = vmatmul.mubr.f32.gmra.mxu0 %v397_v55  ;;  %892 = vmatmul.mubr.f32.gmra.mxu1 %v399_v56  ;;  %v461_v55 = vld [vmem:[%s1890_s24 + $0x3a0] sm:$0xff]  ;;  %v463_v56 = vld [vmem:[%s1890_s24 + $0x3b0] sm:$0xff] }
  0xcf   : > { %671 = vmatprep.mubr.f32.mxu0 %v402_v57  ;;  %896 = vmatprep.mubr.f32.mxu1 %v404_v58  ;;  %v466_v57 = vld [vmem:[%s1890_s24 + $0x3c8] sm:$0xff]  ;;  %v468_v58 = vld [vmem:[%s1890_s24 + $0x3d8] sm:$0xff] }
  0xd2   : > { %672 = vmatmul.mubr.f32.gmra.mxu0 %v401_v59  ;;  %897 = vmatmul.mubr.f32.gmra.mxu1 %v403_v60  ;;  %v465_v59 = vld [vmem:[%s1890_s24 + $0x3c0] sm:$0xff]  ;;  %v467_v60 = vld [vmem:[%s1890_s24 + $0x3d0] sm:$0xff] }
  0xd3   : > { %676 = vmatprep.mubr.f32.mxu0 %v406_v61  ;;  %901 = vmatprep.mubr.f32.mxu1 %v408_v62  ;;  %v470_v61 = vld [vmem:[%s1890_s24 + $0x3e8] sm:$0xff]  ;;  %v472_v62 = vld [vmem:[%s1890_s24 + $0x3f8] sm:$0xff] }
  0xd6   : > { %677 = vmatmul.mubr.f32.gmra.mxu0 %v405_v63  ;;  %902 = vmatmul.mubr.f32.gmra.mxu1 %v407_v1  ;;  %v469_v63 = vld [vmem:[%s1890_s24 + $0x3e0] sm:$0xff]  ;;  %v471_v1 = vld [vmem:[%s1890_s24 + $0x3f0] sm:$0xff]  ;;  %s2357_s24 = sld [smem:[#allocation17_spill]] }
  0xd7   : > { %681 = vmatprep.mubr.f32.mxu0 %v410_v2  ;;  %906 = vmatprep.mubr.f32.mxu1 %v412_v3 }
  0xda   : > { %682 = vmatmul.mubr.f32.gmra.mxu0 %v409_v4  ;;  %907 = vmatmul.mubr.f32.gmra.mxu1 %v411_v5  ;;  %v2167_v4 = vld [vmem:[%s275_s2] ss:$0 sm:$0xff]  ;;  %s1523_s2 = sshll.u32 %s1677_s5, 4  ;;  %s1524_s2 = int_to_ptr.vmem [resolvable:$false] %s1523_s2 }
  0xdb   : > { %686 = vmatprep.mubr.f32.mxu0 %v414_v6  ;;  %911 = vmatprep.mubr.f32.mxu1 %v416_v7  ;;  %s1525_s28 = scalar_lea.vmem %s1524_s2, 8192  ;;  %p1526_p1 = scmp.lt.s32.totalorder %s2241_s26, %s1524_s2 }
  0xdc   : > { %p2360_p11 = scmp.ne.s32.totalorder %s2357_s24, 0  ;;  %p1527_p2 = scmp.lt.s32.totalorder %s1525_s28, %s1519_s27 }
  0xde   : > { %687 = vmatmul.mubr.f32.gmra.mxu0 %v413_v8  ;;  %912 = vmatmul.mubr.f32.gmra.mxu1 %v415_v0  ;;  %p1521_p8 = pnand %p1520_p7, %p2360_p11  ;;  %p1528_p4 = por %p1527_p2, %p1526_p1 }
  0xdf   : > { %691 = vmatprep.mubr.f32.mxu0 %v418_v9  ;;  %916 = vmatprep.mubr.f32.mxu1 %v420_v10 }
  0xe0   : > { %p1522_p9 = pneg %p1521_p8 }
  0xe2   : > { %692 = vmatmul.mubr.f32.gmra.mxu0 %v417_v11  ;;  %917 = vmatmul.mubr.f32.gmra.mxu1 %v419_v12  ;;  %p1529_p5 = pnand %p1528_p4, %p1522_p9 }
  0xe3   : > { %696 = vmatprep.mubr.f32.mxu0 %v422_v13  ;;  %921 = vmatprep.mubr.f32.mxu1 %v424_v14 }
  0xe6   : > { %697 = vmatmul.mubr.f32.gmra.mxu0 %v421_v15  ;;  %922 = vmatmul.mubr.f32.gmra.mxu1 %v423_v16 }
  0xe7   : > { %701 = vmatprep.mubr.f32.mxu0 %v426_v17  ;;  %926 = vmatprep.mubr.f32.mxu1 %v428_v18 }
  0xea   : > { %702 = vmatmul.mubr.f32.gmra.mxu0 %v425_v19  ;;  %927 = vmatmul.mubr.f32.gmra.mxu1 %v427_v20 }
  0xeb   : > { %706 = vmatprep.mubr.f32.mxu0 %v430_v21  ;;  %931 = vmatprep.mubr.f32.mxu1 %v432_v22 }
  0xee   : > { %707 = vmatmul.mubr.f32.gmra.mxu0 %v429_v23  ;;  %932 = vmatmul.mubr.f32.gmra.mxu1 %v431_v24 }
  0xef   : > { %711 = vmatprep.mubr.f32.mxu0 %v434_v25  ;;  %936 = vmatprep.mubr.f32.mxu1 %v436_v26 }
  0xf2   : > { %712 = vmatmul.mubr.f32.gmra.mxu0 %v433_v27  ;;  %937 = vmatmul.mubr.f32.gmra.mxu1 %v435_v28 }
  0xf3   : > { %716 = vmatprep.mubr.f32.mxu0 %v438_v29  ;;  %941 = vmatprep.mubr.f32.mxu1 %v440_v30 }
  0xf6   : > { %717 = vmatmul.mubr.f32.gmra.mxu0 %v437_v31  ;;  %942 = vmatmul.mubr.f32.gmra.mxu1 %v439_v32 }
  0xf7   : > { %721 = vmatprep.mubr.f32.mxu0 %v442_v33  ;;  %946 = vmatprep.mubr.f32.mxu1 %v444_v34 }
  0xfa   : > { %722 = vmatmul.mubr.f32.gmra.mxu0 %v441_v35  ;;  %947 = vmatmul.mubr.f32.gmra.mxu1 %v443_v36 }
  0xfb   : > { %726 = vmatprep.mubr.f32.mxu0 %v446_v37  ;;  %951 = vmatprep.mubr.f32.mxu1 %v448_v38 }
  0xfe   : > { %727 = vmatmul.mubr.f32.gmra.mxu0 %v445_v39  ;;  %952 = vmatmul.mubr.f32.gmra.mxu1 %v447_v40 }
  0xff   : > { %731 = vmatprep.mubr.f32.mxu0 %v450_v41  ;;  %956 = vmatprep.mubr.f32.mxu1 %v452_v42 }
 0x102   : > { %732 = vmatmul.mubr.f32.gmra.mxu0 %v449_v43  ;;  %957 = vmatmul.mubr.f32.gmra.mxu1 %v451_v44 }
 0x103   : > { %736 = vmatprep.mubr.f32.mxu0 %v454_v45  ;;  %961 = vmatprep.mubr.f32.mxu1 %v456_v46 }
 0x106   : > { %737 = vmatmul.mubr.f32.gmra.mxu0 %v453_v47  ;;  %962 = vmatmul.mubr.f32.gmra.mxu1 %v455_v48 }
 0x107   : > { %741 = vmatprep.mubr.f32.mxu0 %v458_v49  ;;  %966 = vmatprep.mubr.f32.mxu1 %v460_v50 }
 0x10a   : > { %742 = vmatmul.mubr.f32.gmra.mxu0 %v457_v51  ;;  %967 = vmatmul.mubr.f32.gmra.mxu1 %v459_v52 }
 0x10b   : > { %746 = vmatprep.mubr.f32.mxu0 %v462_v53  ;;  %971 = vmatprep.mubr.f32.mxu1 %v464_v54 }
 0x10e   : > { %747 = vmatmul.mubr.f32.gmra.mxu0 %v461_v55  ;;  %972 = vmatmul.mubr.f32.gmra.mxu1 %v463_v56 }
 0x10f   : > { %751 = vmatprep.mubr.f32.mxu0 %v466_v57  ;;  %976 = vmatprep.mubr.f32.mxu1 %v468_v58 }
 0x112   : > { %752 = vmatmul.mubr.f32.gmra.mxu0 %v465_v59  ;;  %977 = vmatmul.mubr.f32.gmra.mxu1 %v467_v60 }
 0x113   : > { %756 = vmatprep.mubr.f32.mxu0 %v470_v61  ;;  %981 = vmatprep.mubr.f32.mxu1 %v472_v62 }
 0x116   : > { %757 = vmatmul.mubr.f32.gmra.mxu0 %v469_v63  ;;  %982 = vmatmul.mubr.f32.gmra.mxu1 %v471_v1 }
 0x15a   : > { %v603_v2 = vpop.f32.mrf.mxu0  ;;  %v828_v3 = vpop.f32.mrf.mxu1 }
 0x15b   : > { %v829_v5 = vadd.f32 %v828_v3, %v603_v2 }
 0x15c   : > { %v605_v6 = vpop.f32.mrf.mxu0  ;;  %v830_v7 = vpop.f32.mrf.mxu1 }
 0x15d   : > { %v1093_v8 = vadd.f32 %v2167_v4, %v829_v5 }
 0x15e   : > { %v608_v0 = vpop.f32.mrf.mxu0  ;;  %v833_v9 = vpop.f32.mrf.mxu1 }
 0x15f   : > { %1125 = vst [vmem:[%s2170_s11] sm:$0xff] %v1093_v8  ;;  %v834_v10 = vadd.f32 %v833_v9, %v608_v0 }
 0x160   : > { %v610_v11 = vpop.f32.mrf.mxu0  ;;  %v835_v12 = vpop.f32.mrf.mxu1 }
 0x161   : > { %v1094_v13 = vadd.f32 %v2167_v4, %v834_v10 }
 0x162   : > { %v613_v14 = vpop.f32.mrf.mxu0  ;;  %v838_v15 = vpop.f32.mrf.mxu1 }
 0x163   : > { %1126 = vst [vmem:[%s2170_s11 + $0x8] sm:$0xff] %v1094_v13  ;;  %v839_v16 = vadd.f32 %v838_v15, %v613_v14 }
 0x164   : > { %v615_v17 = vpop.f32.mrf.mxu0  ;;  %v840_v18 = vpop.f32.mrf.mxu1 }
 0x165   : > { %v1095_v19 = vadd.f32 %v2167_v4, %v839_v16 }
 0x166   : > { %v618_v20 = vpop.f32.mrf.mxu0  ;;  %v843_v21 = vpop.f32.mrf.mxu1 }
 0x167   : > { %1127 = vst [vmem:[%s2170_s11 + $0x10] sm:$0xff] %v1095_v19  ;;  %v844_v22 = vadd.f32 %v843_v21, %v618_v20 }
 0x168   : > { %v620_v23 = vpop.f32.mrf.mxu0  ;;  %v845_v24 = vpop.f32.mrf.mxu1 }
 0x169   : > { %v1096_v25 = vadd.f32 %v2167_v4, %v844_v22 }
 0x16a   : > { %v623_v26 = vpop.f32.mrf.mxu0  ;;  %v848_v27 = vpop.f32.mrf.mxu1 }
 0x16b   : > { %1128 = vst [vmem:[%s2170_s11 + $0x18] sm:$0xff] %v1096_v25  ;;  %v849_v28 = vadd.f32 %v848_v27, %v623_v26 }
 0x16c   : > { %v625_v29 = vpop.f32.mrf.mxu0  ;;  %v850_v30 = vpop.f32.mrf.mxu1 }
 0x16d   : > { %v1097_v31 = vadd.f32 %v2167_v4, %v849_v28 }
 0x16e   : > { %v628_v32 = vpop.f32.mrf.mxu0  ;;  %v853_v33 = vpop.f32.mrf.mxu1 }
 0x16f   : > { %1129 = vst [vmem:[%s2170_s11 + $0x20] sm:$0xff] %v1097_v31  ;;  %v854_v34 = vadd.f32 %v853_v33, %v628_v32 }
 0x170   : > { %v630_v35 = vpop.f32.mrf.mxu0  ;;  %v855_v36 = vpop.f32.mrf.mxu1 }
 0x171   : > { %v1098_v37 = vadd.f32 %v2167_v4, %v854_v34 }
 0x172   : > { %v633_v38 = vpop.f32.mrf.mxu0  ;;  %v858_v39 = vpop.f32.mrf.mxu1 }
 0x173   : > { %1130 = vst [vmem:[%s2170_s11 + $0x28] sm:$0xff] %v1098_v37  ;;  %v859_v40 = vadd.f32 %v858_v39, %v633_v38 }
 0x174   : > { %v635_v41 = vpop.f32.mrf.mxu0  ;;  %v860_v42 = vpop.f32.mrf.mxu1 }
 0x175   : > { %v1099_v43 = vadd.f32 %v2167_v4, %v859_v40 }
 0x176   : > { %v638_v44 = vpop.f32.mrf.mxu0  ;;  %v863_v45 = vpop.f32.mrf.mxu1 }
 0x177   : > { %1131 = vst [vmem:[%s2170_s11 + $0x30] sm:$0xff] %v1099_v43  ;;  %v864_v46 = vadd.f32 %v863_v45, %v638_v44 }
 0x178   : > { %v640_v47 = vpop.f32.mrf.mxu0  ;;  %v865_v48 = vpop.f32.mrf.mxu1 }
 0x179   : > { %v1100_v49 = vadd.f32 %v2167_v4, %v864_v46 }
 0x17a   : > { %v643_v50 = vpop.f32.mrf.mxu0  ;;  %v868_v51 = vpop.f32.mrf.mxu1 }
 0x17b   : > { %1132 = vst [vmem:[%s2170_s11 + $0x38] sm:$0xff] %v1100_v49  ;;  %v869_v52 = vadd.f32 %v868_v51, %v643_v50 }
 0x17c   : > { %v645_v53 = vpop.f32.mrf.mxu0  ;;  %v870_v54 = vpop.f32.mrf.mxu1 }
 0x17d   : > { %v1101_v55 = vadd.f32 %v2167_v4, %v869_v52 }
 0x17e   : > { %v648_v56 = vpop.f32.mrf.mxu0  ;;  %v873_v57 = vpop.f32.mrf.mxu1 }
 0x17f   : > { %1133 = vst [vmem:[%s2170_s11 + $0x40] sm:$0xff] %v1101_v55  ;;  %v874_v58 = vadd.f32 %v873_v57, %v648_v56 }
 0x180   : > { %v650_v59 = vpop.f32.mrf.mxu0  ;;  %v875_v60 = vpop.f32.mrf.mxu1 }
 0x181   : > { %v1102_v61 = vadd.f32 %v2167_v4, %v874_v58 }
 0x182   : > { %v653_v62 = vpop.f32.mrf.mxu0  ;;  %v878_v63 = vpop.f32.mrf.mxu1 }
 0x183   : > { %1134 = vst [vmem:[%s2170_s11 + $0x48] sm:$0xff] %v1102_v61  ;;  %v879_v1 = vadd.f32 %v878_v63, %v653_v62 }
 0x184   : > { %v655_v2 = vpop.f32.mrf.mxu0  ;;  %v880_v3 = vpop.f32.mrf.mxu1 }
 0x185   : > { %v1103_v5 = vadd.f32 %v2167_v4, %v879_v1 }
 0x186   : > { %v658_v6 = vpop.f32.mrf.mxu0  ;;  %v883_v7 = vpop.f32.mrf.mxu1 }
 0x187   : > { %1135 = vst [vmem:[%s2170_s11 + $0x50] sm:$0xff] %v1103_v5  ;;  %v884_v8 = vadd.f32 %v883_v7, %v658_v6 }
 0x188   : > { %v660_v0 = vpop.f32.mrf.mxu0  ;;  %v885_v9 = vpop.f32.mrf.mxu1 }
 0x189   : > { %v1104_v10 = vadd.f32 %v2167_v4, %v884_v8 }
 0x18a   : > { %v663_v11 = vpop.f32.mrf.mxu0  ;;  %v888_v12 = vpop.f32.mrf.mxu1 }
 0x18b   : > { %1136 = vst [vmem:[%s2170_s11 + $0x58] sm:$0xff] %v1104_v10  ;;  %v889_v13 = vadd.f32 %v888_v12, %v663_v11 }
 0x18c   : > { %v665_v14 = vpop.f32.mrf.mxu0  ;;  %v890_v15 = vpop.f32.mrf.mxu1 }
 0x18d   : > { %v1105_v16 = vadd.f32 %v2167_v4, %v889_v13 }
 0x18e   : > { %v668_v17 = vpop.f32.mrf.mxu0  ;;  %v893_v18 = vpop.f32.mrf.mxu1 }
 0x18f   : > { %1137 = vst [vmem:[%s2170_s11 + $0x60] sm:$0xff] %v1105_v16  ;;  %v894_v19 = vadd.f32 %v893_v18, %v668_v17 }
 0x190   : > { %v670_v20 = vpop.f32.mrf.mxu0  ;;  %v895_v21 = vpop.f32.mrf.mxu1 }
 0x191   : > { %v1106_v22 = vadd.f32 %v2167_v4, %v894_v19 }
 0x192   : > { %v673_v23 = vpop.f32.mrf.mxu0  ;;  %v898_v24 = vpop.f32.mrf.mxu1 }
 0x193   : > { %1138 = vst [vmem:[%s2170_s11 + $0x68] sm:$0xff] %v1106_v22  ;;  %v899_v25 = vadd.f32 %v898_v24, %v673_v23 }
 0x194   : > { %v675_v26 = vpop.f32.mrf.mxu0  ;;  %v900_v27 = vpop.f32.mrf.mxu1 }
 0x195   : > { %v1107_v28 = vadd.f32 %v2167_v4, %v899_v25 }
 0x196   : > { %v678_v29 = vpop.f32.mrf.mxu0  ;;  %v903_v30 = vpop.f32.mrf.mxu1 }
 0x197   : > { %1139 = vst [vmem:[%s2170_s11 + $0x70] sm:$0xff] %v1107_v28  ;;  %v904_v31 = vadd.f32 %v903_v30, %v678_v29 }
 0x198   : > { %v680_v32 = vpop.f32.mrf.mxu0  ;;  %v905_v33 = vpop.f32.mrf.mxu1 }
 0x199   : > { %v1108_v34 = vadd.f32 %v2167_v4, %v904_v31 }
 0x19a   : > { %v683_v35 = vpop.f32.mrf.mxu0  ;;  %v908_v36 = vpop.f32.mrf.mxu1 }
 0x19b   : > { %1140 = vst [vmem:[%s2170_s11 + $0x78] sm:$0xff] %v1108_v34  ;;  %v909_v37 = vadd.f32 %v908_v36, %v683_v35 }
 0x19c   : > { %v685_v38 = vpop.f32.mrf.mxu0  ;;  %v910_v39 = vpop.f32.mrf.mxu1 }
 0x19d   : > { %v1109_v40 = vadd.f32 %v2167_v4, %v909_v37 }
 0x19e   : > { %v688_v41 = vpop.f32.mrf.mxu0  ;;  %v913_v42 = vpop.f32.mrf.mxu1 }
 0x19f   : > { %1141 = vst [vmem:[%s2170_s11 + $0x80] sm:$0xff] %v1109_v40  ;;  %v914_v43 = vadd.f32 %v913_v42, %v688_v41 }
 0x1a0   : > { %v690_v44 = vpop.f32.mrf.mxu0  ;;  %v915_v45 = vpop.f32.mrf.mxu1 }
 0x1a1   : > { %v1110_v46 = vadd.f32 %v2167_v4, %v914_v43 }
 0x1a2   : > { %v693_v47 = vpop.f32.mrf.mxu0  ;;  %v918_v48 = vpop.f32.mrf.mxu1 }
 0x1a3   : > { %1142 = vst [vmem:[%s2170_s11 + $0x88] sm:$0xff] %v1110_v46  ;;  %v919_v49 = vadd.f32 %v918_v48, %v693_v47 }
 0x1a4   : > { %v695_v50 = vpop.f32.mrf.mxu0  ;;  %v920_v51 = vpop.f32.mrf.mxu1 }
 0x1a5   : > { %v1111_v52 = vadd.f32 %v2167_v4, %v919_v49 }
 0x1a6   : > { %v698_v53 = vpop.f32.mrf.mxu0  ;;  %v923_v54 = vpop.f32.mrf.mxu1 }
 0x1a7   : > { %1143 = vst [vmem:[%s2170_s11 + $0x90] sm:$0xff] %v1111_v52  ;;  %v924_v55 = vadd.f32 %v923_v54, %v698_v53 }
 0x1a8   : > { %v700_v56 = vpop.f32.mrf.mxu0  ;;  %v925_v57 = vpop.f32.mrf.mxu1 }
 0x1a9   : > { %v1112_v58 = vadd.f32 %v2167_v4, %v924_v55 }
 0x1aa   : > { %v703_v59 = vpop.f32.mrf.mxu0  ;;  %v928_v60 = vpop.f32.mrf.mxu1 }
 0x1ab   : > { %1144 = vst [vmem:[%s2170_s11 + $0x98] sm:$0xff] %v1112_v58  ;;  %v929_v61 = vadd.f32 %v928_v60, %v703_v59 }
 0x1ac   : > { %v705_v62 = vpop.f32.mrf.mxu0  ;;  %v930_v63 = vpop.f32.mrf.mxu1 }
 0x1ad   : > { %v1113_v1 = vadd.f32 %v2167_v4, %v929_v61 }
 0x1ae   : > { %v708_v2 = vpop.f32.mrf.mxu0  ;;  %v933_v3 = vpop.f32.mrf.mxu1 }
 0x1af   : > { %1145 = vst [vmem:[%s2170_s11 + $0xa0] sm:$0xff] %v1113_v1  ;;  %v934_v5 = vadd.f32 %v933_v3, %v708_v2 }
 0x1b0   : > { %v710_v6 = vpop.f32.mrf.mxu0  ;;  %v935_v7 = vpop.f32.mrf.mxu1 }
 0x1b1   : > { %v1114_v8 = vadd.f32 %v2167_v4, %v934_v5 }
 0x1b2   : > { %v713_v0 = vpop.f32.mrf.mxu0  ;;  %v938_v9 = vpop.f32.mrf.mxu1 }
 0x1b3   : > { %1146 = vst [vmem:[%s2170_s11 + $0xa8] sm:$0xff] %v1114_v8  ;;  %v939_v10 = vadd.f32 %v938_v9, %v713_v0 }
 0x1b4   : > { %v715_v11 = vpop.f32.mrf.mxu0  ;;  %v940_v12 = vpop.f32.mrf.mxu1 }
 0x1b5   : > { %v1115_v13 = vadd.f32 %v2167_v4, %v939_v10 }
 0x1b6   : > { %v718_v14 = vpop.f32.mrf.mxu0  ;;  %v943_v15 = vpop.f32.mrf.mxu1 }
 0x1b7   : > { %1147 = vst [vmem:[%s2170_s11 + $0xb0] sm:$0xff] %v1115_v13  ;;  %v944_v16 = vadd.f32 %v943_v15, %v718_v14 }
 0x1b8   : > { %v720_v17 = vpop.f32.mrf.mxu0  ;;  %v945_v18 = vpop.f32.mrf.mxu1 }
 0x1b9   : > { %v1116_v19 = vadd.f32 %v2167_v4, %v944_v16 }
 0x1ba   : > { %v723_v20 = vpop.f32.mrf.mxu0  ;;  %v948_v21 = vpop.f32.mrf.mxu1 }
 0x1bb   : > { %1148 = vst [vmem:[%s2170_s11 + $0xb8] sm:$0xff] %v1116_v19  ;;  %v949_v22 = vadd.f32 %v948_v21, %v723_v20 }
 0x1bc   : > { %v725_v23 = vpop.f32.mrf.mxu0  ;;  %v950_v24 = vpop.f32.mrf.mxu1 }
 0x1bd   : > { %v1117_v25 = vadd.f32 %v2167_v4, %v949_v22 }
 0x1be   : > { %v728_v26 = vpop.f32.mrf.mxu0  ;;  %v953_v27 = vpop.f32.mrf.mxu1 }
 0x1bf   : > { %1149 = vst [vmem:[%s2170_s11 + $0xc0] sm:$0xff] %v1117_v25  ;;  %v954_v28 = vadd.f32 %v953_v27, %v728_v26 }
 0x1c0   : > { %v730_v29 = vpop.f32.mrf.mxu0  ;;  %v955_v30 = vpop.f32.mrf.mxu1 }
 0x1c1   : > { %v1118_v31 = vadd.f32 %v2167_v4, %v954_v28 }
 0x1c2   : > { %v733_v32 = vpop.f32.mrf.mxu0  ;;  %v958_v33 = vpop.f32.mrf.mxu1 }
 0x1c3   : > { %1150 = vst [vmem:[%s2170_s11 + $0xc8] sm:$0xff] %v1118_v31  ;;  %v959_v34 = vadd.f32 %v958_v33, %v733_v32 }
 0x1c4   : > { %v735_v35 = vpop.f32.mrf.mxu0  ;;  %v960_v36 = vpop.f32.mrf.mxu1 }
 0x1c5   : > { %v1119_v37 = vadd.f32 %v2167_v4, %v959_v34 }
 0x1c6   : > { %v738_v38 = vpop.f32.mrf.mxu0  ;;  %v963_v39 = vpop.f32.mrf.mxu1 }
 0x1c7   : > { %1151 = vst [vmem:[%s2170_s11 + $0xd0] sm:$0xff] %v1119_v37  ;;  %v964_v40 = vadd.f32 %v963_v39, %v738_v38 }
 0x1c8   : > { %v740_v41 = vpop.f32.mrf.mxu0  ;;  %v965_v42 = vpop.f32.mrf.mxu1 }
 0x1c9   : > { %v1120_v43 = vadd.f32 %v2167_v4, %v964_v40 }
 0x1ca   : > { %v743_v44 = vpop.f32.mrf.mxu0  ;;  %v968_v45 = vpop.f32.mrf.mxu1 }
 0x1cb   : > { %1152 = vst [vmem:[%s2170_s11 + $0xd8] sm:$0xff] %v1120_v43  ;;  %v969_v46 = vadd.f32 %v968_v45, %v743_v44 }
 0x1cc   : > { %v745_v47 = vpop.f32.mrf.mxu0  ;;  %v970_v48 = vpop.f32.mrf.mxu1 }
 0x1cd   : > { %v1121_v49 = vadd.f32 %v2167_v4, %v969_v46 }
 0x1ce   : > { %v748_v50 = vpop.f32.mrf.mxu0  ;;  %v973_v51 = vpop.f32.mrf.mxu1 }
 0x1cf   : > { %1153 = vst [vmem:[%s2170_s11 + $0xe0] sm:$0xff] %v1121_v49  ;;  %v974_v52 = vadd.f32 %v973_v51, %v748_v50 }
 0x1d0   : > { %v750_v53 = vpop.f32.mrf.mxu0  ;;  %v975_v54 = vpop.f32.mrf.mxu1 }
 0x1d1   : > { %v1122_v55 = vadd.f32 %v2167_v4, %v974_v52 }
 0x1d2   : > { %v753_v56 = vpop.f32.mrf.mxu0  ;;  %v978_v57 = vpop.f32.mrf.mxu1 }
 0x1d3   : > { %1154 = vst [vmem:[%s2170_s11 + $0xe8] sm:$0xff] %v1122_v55  ;;  %v979_v58 = vadd.f32 %v978_v57, %v753_v56 }
 0x1d4   : > { %v755_v59 = vpop.f32.mrf.mxu0  ;;  %v980_v60 = vpop.f32.mrf.mxu1 }
 0x1d5   : > { %v1123_v61 = vadd.f32 %v2167_v4, %v979_v58 }
 0x1d6   : > { %v758_v62 = vpop.f32.mrf.mxu0  ;;  %v983_v63 = vpop.f32.mrf.mxu1 }
 0x1d7   : > { %1155 = vst [vmem:[%s2170_s11 + $0xf0] sm:$0xff] %v1123_v61  ;;  %v984_v1 = vadd.f32 %v983_v63, %v758_v62 }
 0x1d8   : > { %v760_v2 = vpop.f32.mrf.mxu0  ;;  %v985_v3 = vpop.f32.mrf.mxu1 }
 0x1d9   : > { %v1124_v5 = vadd.f32 %v2167_v4, %v984_v1 }
 0x1db   : > { %1156 = vst [vmem:[%s2170_s11 + $0xf8] sm:$0xff] %v1124_v5 }
 0x1dc   : > { %1532 = shalt.err (!%p1529_p5)
}
 0x1dd   : > { %s1533_s22 = scalar_lea.hbm %s2239_s4, 4096  ;;  %s1537_s29 = scalar_lea.hbm %s2359_s10, 24576 }
 0x1de   : > { %p1534_p10 = scmp.ne.s32.totalorder %s2239_s4, %s1533_s22  ;;  %p1538_p13 = scmp.lt.s32.totalorder %s2239_s4, %s2359_s10 }
 0x1df   : > { %p1539_p0 = scmp.lt.s32.totalorder %s1537_s29, %s1533_s22 }
 0x1e0   : > { %p1535_p12 = pnand %p1534_p10, %p2360_p11 }
 0x1e1   : > { %p1540_p6 = por %p1539_p0, %p1538_p13 }
 0x1e2   : > { %p1536_p3 = pneg %p1535_p12 }
 0x1e4   : > { %p1541_p7 = pnand %p1540_p6, %p1536_p3 }
 0x1e6   : > { %1544 = shalt.err (!%p1541_p7)
}
 0x1e7   : > { %s1678_s9 = smov 128   ;;  %s1679_s18 = smov 384  }
 0x1e8   : > { %s1680_s21 = smov 8  }
 0x1e9   : > { %1327 = dma.vmem_to_hbm [thread:$0]  (%p2360_p11), %s2241_s26, 4096, %s2239_s4, %s2247_s15, %s1678_s9, %s1679_s18, %s1680_s21  }
 0x1ea PF: > { %p1341_p8 = scmp.ge.s32.totalorder %s1667_s25, 2  ;;  %s1188_s27 = sand.u32 1, %s1615_s12  }
 0x1eb   : > { %p2361_p9 = scmp.ne.s32.totalorder %s2353_s30, 0  ;;  %s1189_s5 = scalar_lea.sflag [#allocation5], %s1188_s27 }
 0x1ed   : > { %p1337_p1 = pnand %p1341_p8, %p2361_p9 }
 0x1ef   : > { %p1338_p2 = pneg %p1337_p1 }
 0x1f1   : > { %1610 = dma.done.wait (%p1338_p2), %s1189_s5, 4096  }
 0x1f2   : > { %1612 = vsyncadd (%p1338_p2), %s1189_s5, 4294963200  ;;  %s22_s25 = sadd.s32 1, %s1667_s25   ;;  %s2363_s24 = sld [smem:[#allocation16_spill]] }
 0x1f3   : > { %p2275_p4 = scmp.ge.s32.totalorder %s22_s25, 8   ;;  %s2364_s22 = sld [smem:[#allocation13_spill]] }
 0x1f4   : > { %s2365_s30 = sld [smem:[#allocation14_spill]]  ;;  %s2367_s12 = smov %s1619_s13 }
 0x1f5   : > { %s2366_s26 = sld [smem:[#allocation15_spill]]  ;;  %s2368_s13 = smov %s1623_s14 }
 0x1f6   : > { %s2369_s14 = smov %s1864_s0  ;;  %s2370_s15 = smov %s1631_s16 }
 0x1f7   : > { %s2371_s16 = smov %s1635_s17  ;;  %s2373_s18 = smov %s1643_s19 }
 0x1f8   : > { %s2372_s17 = smov %s2363_s24  ;;  %s2374_s19 = smov %s1647_s20 }
 0x1f9   : > { %s2375_s20 = smov %s1861_s3  ;;  %s2376_s21 = smov %s1659_s23 }
 0x1fa   : > { %s2377_s23 = smov %s2365_s30  ;;  %21 = sbr.rel (!%p2275_p4) target bundleno = 16 (0x10), region = 101 }
 0x1fb   : > { %s2378_s24 = smov %s2366_s26 }
 0x1ff   :  { %1194 = vsyncpa [#allocation4], 1 }
 0x200   :  { %1196 = vsyncpa [#allocation4 + $0x1], 1 }
 0x201   :  { %1197 = vsyncpa [#allocation7], 1 }
 0x202   :  { %1199 = vsyncpa [#allocation7 + $0x1], 1 }
 0x203   :  { %1200 = vsyncpa [#allocation5], 1 }
 0x204   :  { %1202 = vsyncpa [#allocation5 + $0x1], 1 }

</bundles_post_ra>
